<compile_context>
chip_gen: v5e
topology: v5e:2x2
jax: 0.10.0
libtpu: 0.0.40
codegen_flags: <defaults>
</compile_context>

<pallas_src>
import jax
import jax.numpy as jnp
from jax.experimental import pallas as pl
from jax.experimental.pallas import tpu as pltpu

# ----------------------------- small model dims -----------------------------
B = 2              # batch
C_IN = 3           # image channels
H = W = 16         # image spatial size
HW = H * W
C_CONV = 32        # conv channels (ComponentClassifier embedding, scaled down)
FEAT_DIM = 128     # vision_feature_dim (scaled down from 512)
CLS_DIM = 5        # vision_classifier_dim
CLS_PAD = 128      # lane-dense padding for classifier logits
PROJ_HIDDEN = 128  # projection_hidden_dim (scaled down from 512)
LLM_DIM = 128      # llm_embedding_dim (scaled down from 576)
FF_DIM = 256       # LLM MLP hidden dim
SEQ = 8            # sequence length
VOCAB = 64         # vocab size (incl. the added special tokens)
VOCAB_PAD = 128    # lane-dense padding for embedding table / LM head
PATCH_DIM = 9 * C_IN          # 27
PATCH_PAD = 128               # lane-dense padding for im2col patches
IMAGE_TOKEN_ID = VOCAB - 2    # '<image>' special token id


# ----------------------------- fused forward kernel --------------------------
def fused_forward_kernel(
    # per-batch activations / token inputs
    patches_ref, ids_ref, write_ref, mask_ref,
    # frozen vision CNN
    wconv_ref, bconv_ref, fc1w_ref, fc1b_ref, fc2w_ref, fc2b_ref,
    # trainable projection layer
    pw1f_ref, pw1c_ref, pb1_ref, pw2_ref, pb2_ref,
    # frozen LLM
    embed_ref, wqkv_ref, wo_ref, w1_ref, b1_ref, w2_ref, b2_ref, wlm_ref,
    # output
    out_ref,
):
    f32 = jnp.float32
    bf16 = jnp.bfloat16
    b = pl.program_id(0)     # grid axis == batch index

    def mm(a, w):
        # bf16 MXU matmul, fp32 accumulation.
        return jnp.dot(a.astype(bf16), w.astype(bf16), preferred_element_type=f32)

    # ---- frozen vision CNN: im2col conv (one matmul) + ReLU + avg pool (MXU)
    conv = jnp.maximum(mm(patches_ref[...], wconv_ref[...]) + bconv_ref[...], 0.0)   # (256, 32)
    pool_row = jnp.full((1, HW), 1.0 / HW, bf16)                                     # MXU pooling
    pooled = jnp.dot(pool_row, conv.astype(bf16), preferred_element_type=f32)        # (1, 32)
    features = jnp.maximum(mm(pooled, fc1w_ref[...]) + fc1b_ref[...], 0.0)           # (1, 128)
    # logits padded to 128 lanes; columns >= CLS_DIM are exactly 0.
    logits = mm(features, fc2w_ref[...]) + fc2b_ref[...]                             # (1, 128)

    # ---- projection layer on (features, sigmoid(logits))
    # sigmoid(0)=0.5 on the padded columns, but the matching pw1c rows are zero.
    sig = jax.nn.sigmoid(logits)
    hproj = jnp.maximum(
        mm(features, pw1f_ref[...]) + mm(sig, pw1c_ref[...]) + pb1_ref[...], 0.0)    # (1, 128)
    vis = mm(hproj, pw2_ref[...]) + pb2_ref[...]                                     # (1, 128)

    # ---- LLM embedding lookup (one-hot matmul, 2-D) + first-<image>-token inject
    onehot = (ids_ref[...] ==
              jax.lax.broadcasted_iota(jnp.int32, (SEQ, VOCAB_PAD), 1)).astype(bf16)  # (8, 128)
    emb = jnp.dot(onehot, embed_ref[...], preferred_element_type=f32)                 # (8, 128)
    x = jnp.where(write_ref[...] > 0.5, vis, emb)                                     # (8, 128)

    def rms(v):
        return v * jax.lax.rsqrt(jnp.mean(v * v, axis=-1, keepdims=True) + 1e-6)

    # ---- frozen LLM block: pre-RMSNorm causal self-attention (single head)
    h = rms(x).astype(bf16)                                # cast once for the fused QKV matmul
    qkv = jnp.dot(h, wqkv_ref[...], preferred_element_type=f32)                       # (8, 384)
    q = qkv[:, :LLM_DIM]
    k = qkv[:, LLM_DIM:2 * LLM_DIM]
    v = qkv[:, 2 * LLM_DIM:]

    scale = 1.0 / jnp.sqrt(jnp.float32(LLM_DIM))
    sc = jax.lax.dot_general(q.astype(bf16), k.astype(bf16),
                             (((1,), (1,)), ((), ())),
                             preferred_element_type=f32) * scale                      # (8, 8)
    row = jax.lax.broadcasted_iota(jnp.int32, (SEQ, SEQ), 0)
    col = jax.lax.broadcasted_iota(jnp.int32, (SEQ, SEQ), 1)
    mask_row = mask_ref[pl.ds(b, 1), :]                                               # (1, 8)
    keep = (col <= row) & (mask_row > 0.5)
    # NOTE: fully-masked query rows degrade to a uniform softmax over -1e9 scores
    # (benign for the given masks; such rows must stay masked downstream).
    sc = jnp.where(keep, sc, jnp.float32(-1e9))
    attn = jax.nn.softmax(sc, axis=-1)
    ctx = jnp.dot(attn.astype(bf16), v.astype(bf16), preferred_element_type=f32)      # (8, 128)
    x = x + mm(ctx, wo_ref[...])

    # ---- MLP
    h = rms(x)
    # TODO(synk): PyTorch nn.GELU defaults to exact erf; tanh-approx GELU kept here
    # for guaranteed Mosaic lowering (same as the previously validated kernel).
    hid = jax.nn.gelu(mm(h, w1_ref[...]) + b1_ref[...])
    x = x + mm(hid, w2_ref[...]) + b2_ref[...]

    # ---- LM head (vocab padded to 128 -> unmasked lane-dense store)
    out_ref[...] = mm(rms(x), wlm_ref[...])                                           # (8, 128)


# ------------------------- activation-side preprocessing ---------------------
def _im2col_3x3_same(x_nhwc):
    """(B,H,W,Cin) -> (B*H*W, 9*Cin) patch matrix ('same' zero padding)."""
    Bb, Hh, Ww, Ci = x_nhwc.shape
    xp = jnp.pad(x_nhwc, ((0, 0), (1, 1), (1, 1), (0, 0)))
    cols = [xp[:, kh:kh + Hh, kw:kw + Ww, :] for kh in range(3) for kw in range(3)]
    return jnp.concatenate(cols, axis=-1).reshape(Bb * Hh * Ww, 9 * Ci)


# ---------------- one-time frozen-weight preprocessing (hoisted) -------------
def prepare_params(params):
    """bf16 cast / pad / fuse all frozen weights ONCE (outside the per-call jit)."""
    bf = lambda w: w.astype(jnp.bfloat16)
    wconv = params['conv_w'].reshape(PATCH_DIM, C_CONV)              # (kh,kw,cin) row order
    wconv = jnp.pad(wconv, ((0, PATCH_PAD - PATCH_DIM), (0, 0)))
    fc2w = jnp.pad(params['fc2_w'], ((0, 0), (0, CLS_PAD - CLS_DIM)))
    fc2b = jnp.pad(params['fc2_b'], (0, CLS_PAD - CLS_DIM))
    pw1c = jnp.pad(params['proj_w1c'], ((0, CLS_PAD - CLS_DIM), (0, 0)))
    embed = jnp.pad(params['embed'], ((0, VOCAB_PAD - VOCAB), (0, 0)))
    wqkv = jnp.concatenate([params['wq'], params['wk'], params['wv']], axis=1)
    wlm = jnp.pad(params['wlm'], ((0, 0), (0, VOCAB_PAD - VOCAB)))
    return {
        'wconv': bf(wconv), 'bconv': params['conv_b'].reshape(1, C_CONV),
        'fc1w': bf(params['fc1_w']), 'fc1b': params['fc1_b'].reshape(1, FEAT_DIM),
        'fc2w': bf(fc2w), 'fc2b': fc2b.reshape(1, CLS_PAD),
        'pw1f': bf(params['proj_w1f']), 'pw1c': bf(pw1c),
        'pb1': params['proj_b1'].reshape(1, PROJ_HIDDEN),
        'pw2': bf(params['proj_w2']), 'pb2': params['proj_b2'].reshape(1, LLM_DIM),
        'embed': bf(embed),
        'wqkv': bf(wqkv), 'wo': bf(params['wo']),
        'w1': bf(params['w1']), 'b1': params['b1'].reshape(1, FF_DIM),
        'w2': bf(params['w2']), 'b2': params['b2'].reshape(1, LLM_DIM),
        'wlm': bf(wlm),
    }


# ------------------------- wrapper (1 pallas_call, grid=(B,)) -----------------
def car_llava_phase1_forward(prep, images_nchw, input_ids, attention_mask):
    # activation-only preprocessing (frozen-weight prep is cached in `prep`)
    x_nhwc = jnp.transpose(images_nchw, (0, 2, 3, 1))                 # NCHW -> NHWC
    patches = _im2col_3x3_same(x_nhwc)                                # (B*H*W, 27)
    patches = jnp.pad(patches, ((0, 0), (0, PATCH_PAD - PATCH_DIM))).astype(jnp.bfloat16)

    ids = input_ids.astype(jnp.int32)
    is_img = ids == IMAGE_TOKEN_ID
    first = jnp.cumsum(is_img.astype(jnp.int32), axis=1) == 1         # first <image> hit only
    write = (is_img & first).astype(jnp.float32).reshape(B * SEQ, 1)  # (B*S, 1) write mask
    ids_col = ids.reshape(B * SEQ, 1)                                 # (B*S, 1)
    mask = attention_mask.astype(jnp.float32)                         # (B, S)

    weight_args = (prep['wconv'], prep['bconv'], prep['fc1w'], prep['fc1b'],
                   prep['fc2w'], prep['fc2b'], prep['pw1f'], prep['pw1c'],
                   prep['pb1'], prep['pw2'], prep['pb2'], prep['embed'],
                   prep['wqkv'], prep['wo'], prep['w1'], prep['b1'],
                   prep['w2'], prep['b2'], prep['wlm'])

    def _full(shape):
        nd = len(shape)
        return pl.BlockSpec(shape, lambda b: (0,) * nd)   # whole array, constant block index

    in_specs = ([pl.BlockSpec((HW, PATCH_PAD), lambda b: (b, 0)),     # per-batch patches
                 pl.BlockSpec((SEQ, 1), lambda b: (b, 0)),            # per-batch ids
                 pl.BlockSpec((SEQ, 1), lambda b: (b, 0)),            # per-batch write mask
                 _full((B, SEQ))]                                     # attention mask (full)
                + [_full(w.shape) for w in weight_args])

    lm = pl.pallas_call(
        fused_forward_kernel,
        grid=(B,),
        in_specs=in_specs,
        out_specs=pl.BlockSpec((SEQ, VOCAB_PAD), lambda b: (b, 0)),
        out_shape=jax.ShapeDtypeStruct((B * SEQ, VOCAB_PAD), jnp.float32),
        compiler_params=pltpu.CompilerParams(dimension_semantics=("parallel",)),
    )(patches, ids_col, write, mask, *weight_args)

    # TODO(synk): PyTorch returns the full HF CausalLMOutput dict; we return lm logits.
    return lm[:, :VOCAB].reshape(B, SEQ, VOCAB)


# ------------------------------ parameter init --------------------------------
def init_params(key):
    ks = jax.random.split(key, 16)
    s = 0.02
    return {
        'conv_w': jax.random.normal(ks[0], (3, 3, C_IN, C_CONV), jnp.float32) * s,
        'conv_b': jnp.zeros((C_CONV,), jnp.float32),
        'fc1_w': jax.random.normal(ks[1], (C_CONV, FEAT_DIM), jnp.float32) * s,
        'fc1_b': jnp.zeros((FEAT_DIM,), jnp.float32),
        'fc2_w': jax.random.normal(ks[2], (FEAT_DIM, CLS_DIM), jnp.float32) * s,
        'fc2_b': jnp.zeros((CLS_DIM,), jnp.float32),
        'proj_w1f': jax.random.normal(ks[3], (FEAT_DIM, PROJ_HIDDEN), jnp.float32) * s,
        'proj_w1c': jax.random.normal(ks[4], (CLS_DIM, PROJ_HIDDEN), jnp.float32) * s,
        'proj_b1': jnp.zeros((PROJ_HIDDEN,), jnp.float32),
        'proj_w2': jax.random.normal(ks[5], (PROJ_HIDDEN, LLM_DIM), jnp.float32) * s,
        'proj_b2': jnp.zeros((LLM_DIM,), jnp.float32),
        'embed': jax.random.normal(ks[6], (VOCAB, LLM_DIM), jnp.float32) * s,
        'wq': jax.random.normal(ks[7], (LLM_DIM, LLM_DIM), jnp.float32) * s,
        'wk': jax.random.normal(ks[8], (LLM_DIM, LLM_DIM), jnp.float32) * s,
        'wv': jax.random.normal(ks[9], (LLM_DIM, LLM_DIM), jnp.float32) * s,
        'wo': jax.random.normal(ks[10], (LLM_DIM, LLM_DIM), jnp.float32) * s,
        'w1': jax.random.normal(ks[11], (LLM_DIM, FF_DIM), jnp.float32) * s,
        'b1': jnp.zeros((FF_DIM,), jnp.float32),
        'w2': jax.random.normal(ks[12], (FF_DIM, LLM_DIM), jnp.float32) * s,
        'b2': jnp.zeros((LLM_DIM,), jnp.float32),
        'wlm': jax.random.normal(ks[13], (LLM_DIM, VOCAB), jnp.float32) * s,
    }


if __name__ == "__main__":
    key = jax.random.PRNGKey(0)
    pkey, ikey, tkey = jax.random.split(key, 3)
    params = init_params(pkey)
    prep = prepare_params(params)          # one-time frozen-weight prep (outside jit)

    images = jax.random.normal(ikey, (B, C_IN, H, W), jnp.float32)            # NCHW
    input_ids = jax.random.randint(tkey, (B, SEQ), 0, VOCAB - 2, dtype=jnp.int32)
    input_ids = input_ids.at[:, 1].set(IMAGE_TOKEN_ID)                        # '<image>'
    attention_mask = jnp.ones((B, SEQ), jnp.float32).at[1, -2:].set(0.0)

    fwd = jax.jit(car_llava_phase1_forward)
    out = fwd(prep, images, input_ids, attention_mask)
    jax.block_until_ready(out)
    assert out.shape == (B, SEQ, VOCAB)
    print("KERNEL_OK")
</pallas_src>

<mosaic_0001>
module attributes {stable_mosaic.version = 11 : i64} {
  func.func @fused_forward_kernel(%arg0: i32, %arg1: memref<256x128xbf16, #tpu.memory_space<vmem>>, %arg2: memref<8x1xi32, #tpu.memory_space<vmem>>, %arg3: memref<8x1xf32, #tpu.memory_space<vmem>>, %arg4: memref<2x8xf32, #tpu.memory_space<vmem>>, %arg5: memref<128x32xbf16, #tpu.memory_space<vmem>>, %arg6: memref<1x32xf32, #tpu.memory_space<vmem>>, %arg7: memref<32x128xbf16, #tpu.memory_space<vmem>>, %arg8: memref<1x128xf32, #tpu.memory_space<vmem>>, %arg9: memref<128x128xbf16, #tpu.memory_space<vmem>>, %arg10: memref<1x128xf32, #tpu.memory_space<vmem>>, %arg11: memref<128x128xbf16, #tpu.memory_space<vmem>>, %arg12: memref<128x128xbf16, #tpu.memory_space<vmem>>, %arg13: memref<1x128xf32, #tpu.memory_space<vmem>>, %arg14: memref<128x128xbf16, #tpu.memory_space<vmem>>, %arg15: memref<1x128xf32, #tpu.memory_space<vmem>>, %arg16: memref<128x128xbf16, #tpu.memory_space<vmem>>, %arg17: memref<128x384xbf16, #tpu.memory_space<vmem>>, %arg18: memref<128x128xbf16, #tpu.memory_space<vmem>>, %arg19: memref<128x256xbf16, #tpu.memory_space<vmem>>, %arg20: memref<1x256xf32, #tpu.memory_space<vmem>>, %arg21: memref<256x128xbf16, #tpu.memory_space<vmem>>, %arg22: memref<1x128xf32, #tpu.memory_space<vmem>>, %arg23: memref<128x128xbf16, #tpu.memory_space<vmem>>, %arg24: memref<8x128xf32, #tpu.memory_space<vmem>>) attributes {dimension_semantics = [#tpu.dimension_semantics<parallel>], iteration_bounds = array<i64: 2>, scalar_prefetch = 0 : i64, scratch_operands = 0 : i64, tpu.core_type = #tpu.core_type<tc>, window_params = [{transform_indices = @transform_0, window_bounds = array<i64: 256, 128>}, {transform_indices = @transform_1, window_bounds = array<i64: 8, 1>}, {transform_indices = @transform_2, window_bounds = array<i64: 8, 1>}, {pipeline_mode = #tpu.pipeline_mode<synchronous>, transform_indices = @transform_3, window_bounds = array<i64: 2, 8>}, {pipeline_mode = #tpu.pipeline_mode<synchronous>, transform_indices = @transform_4, window_bounds = array<i64: 128, 32>}, {pipeline_mode = #tpu.pipeline_mode<synchronous>, transform_indices = @transform_5, window_bounds = array<i64: 1, 32>}, {pipeline_mode = #tpu.pipeline_mode<synchronous>, transform_indices = @transform_6, window_bounds = array<i64: 32, 128>}, {pipeline_mode = #tpu.pipeline_mode<synchronous>, transform_indices = @transform_7, window_bounds = array<i64: 1, 128>}, {pipeline_mode = #tpu.pipeline_mode<synchronous>, transform_indices = @transform_8, window_bounds = array<i64: 128, 128>}, {pipeline_mode = #tpu.pipeline_mode<synchronous>, transform_indices = @transform_9, window_bounds = array<i64: 1, 128>}, {pipeline_mode = #tpu.pipeline_mode<synchronous>, transform_indices = @transform_10, window_bounds = array<i64: 128, 128>}, {pipeline_mode = #tpu.pipeline_mode<synchronous>, transform_indices = @transform_11, window_bounds = array<i64: 128, 128>}, {pipeline_mode = #tpu.pipeline_mode<synchronous>, transform_indices = @transform_12, window_bounds = array<i64: 1, 128>}, {pipeline_mode = #tpu.pipeline_mode<synchronous>, transform_indices = @transform_13, window_bounds = array<i64: 128, 128>}, {pipeline_mode = #tpu.pipeline_mode<synchronous>, transform_indices = @transform_14, window_bounds = array<i64: 1, 128>}, {pipeline_mode = #tpu.pipeline_mode<synchronous>, transform_indices = @transform_15, window_bounds = array<i64: 128, 128>}, {pipeline_mode = #tpu.pipeline_mode<synchronous>, transform_indices = @transform_16, window_bounds = array<i64: 128, 384>}, {pipeline_mode = #tpu.pipeline_mode<synchronous>, transform_indices = @transform_17, window_bounds = array<i64: 128, 128>}, {pipeline_mode = #tpu.pipeline_mode<synchronous>, transform_indices = @transform_18, window_bounds = array<i64: 128, 256>}, {pipeline_mode = #tpu.pipeline_mode<synchronous>, transform_indices = @transform_19, window_bounds = array<i64: 1, 256>}, {pipeline_mode = #tpu.pipeline_mode<synchronous>, transform_indices = @transform_20, window_bounds = array<i64: 256, 128>}, {pipeline_mode = #tpu.pipeline_mode<synchronous>, transform_indices = @transform_21, window_bounds = array<i64: 1, 128>}, {pipeline_mode = #tpu.pipeline_mode<synchronous>, transform_indices = @transform_22, window_bounds = array<i64: 128, 128>}, {transform_indices = @transform_23, window_bounds = array<i64: 8, 128>}]} {
    %c0 = arith.constant 0 : index
    %c0_0 = arith.constant 0 : index
    %0 = vector.load %arg1[%c0, %c0_0] : memref<256x128xbf16, #tpu.memory_space<vmem>>, vector<256x128xbf16>
    %c0_1 = arith.constant 0 : index
    %c0_2 = arith.constant 0 : index
    %1 = vector.load %arg5[%c0_1, %c0_2] : memref<128x32xbf16, #tpu.memory_space<vmem>>, vector<128x32xbf16>
    %cst = arith.constant dense<0.000000e+00> : vector<256x32xf32>
    %2 = tpu.matmul %0, %1, %cst {dimension_numbers = #tpu.dot_dimension_numbers<[1], [0], [0], [1], [0, 0, 1, 1], [], []>} : vector<256x128xbf16>, vector<128x32xbf16>, vector<256x32xf32> -> vector<256x32xf32>
    %c0_3 = arith.constant 0 : index
    %c0_4 = arith.constant 0 : index
    %3 = vector.load %arg6[%c0_3, %c0_4] : memref<1x32xf32, #tpu.memory_space<vmem>>, vector<1x32xf32>
    %4 = vector.broadcast %3 : vector<1x32xf32> to vector<256x32xf32>
    %5 = arith.addf %2, %4 : vector<256x32xf32>
    %cst_5 = arith.constant 0.000000e+00 : f32
    %6 = vector.broadcast %cst_5 : f32 to vector<256x32xf32>
    %7 = arith.maximumf %5, %6 : vector<256x32xf32>
    %cst_6 = arith.constant 3.906250e-03 : bf16
    %8 = vector.broadcast %cst_6 : bf16 to vector<1x256xbf16>
    %9 = arith.truncf %7 : vector<256x32xf32> to vector<256x32xbf16>
    %cst_7 = arith.constant dense<0.000000e+00> : vector<1x32xf32>
    %10 = tpu.matmul %8, %9, %cst_7 {dimension_numbers = #tpu.dot_dimension_numbers<[1], [0], [0], [1], [0, 0, 1, 1], [], []>} : vector<1x256xbf16>, vector<256x32xbf16>, vector<1x32xf32> -> vector<1x32xf32>
    %c0_8 = arith.constant 0 : index
    %c0_9 = arith.constant 0 : index
    %11 = vector.load %arg7[%c0_8, %c0_9] : memref<32x128xbf16, #tpu.memory_space<vmem>>, vector<32x128xbf16>
    %12 = arith.truncf %10 : vector<1x32xf32> to vector<1x32xbf16>
    %cst_10 = arith.constant dense<0.000000e+00> : vector<1x128xf32>
    %13 = tpu.matmul %12, %11, %cst_10 {dimension_numbers = #tpu.dot_dimension_numbers<[1], [0], [0], [1], [0, 0, 1, 1], [], []>} : vector<1x32xbf16>, vector<32x128xbf16>, vector<1x128xf32> -> vector<1x128xf32>
    %c0_11 = arith.constant 0 : index
    %c0_12 = arith.constant 0 : index
    %14 = vector.load %arg8[%c0_11, %c0_12] : memref<1x128xf32, #tpu.memory_space<vmem>>, vector<1x128xf32>
    %15 = arith.addf %13, %14 : vector<1x128xf32>
    %cst_13 = arith.constant 0.000000e+00 : f32
    %16 = vector.broadcast %cst_13 : f32 to vector<1x128xf32>
    %17 = arith.maximumf %15, %16 : vector<1x128xf32>
    %c0_14 = arith.constant 0 : index
    %c0_15 = arith.constant 0 : index
    %18 = vector.load %arg9[%c0_14, %c0_15] : memref<128x128xbf16, #tpu.memory_space<vmem>>, vector<128x128xbf16>
    %19 = arith.truncf %17 : vector<1x128xf32> to vector<1x128xbf16>
    %cst_16 = arith.constant dense<0.000000e+00> : vector<1x128xf32>
    %20 = tpu.matmul %19, %18, %cst_16 {dimension_numbers = #tpu.dot_dimension_numbers<[1], [0], [0], [1], [0, 0, 1, 1], [], []>} : vector<1x128xbf16>, vector<128x128xbf16>, vector<1x128xf32> -> vector<1x128xf32>
    %c0_17 = arith.constant 0 : index
    %c0_18 = arith.constant 0 : index
    %21 = vector.load %arg10[%c0_17, %c0_18] : memref<1x128xf32, #tpu.memory_space<vmem>>, vector<1x128xf32>
    %22 = arith.addf %20, %21 : vector<1x128xf32>
    %23 = arith.negf %22 : vector<1x128xf32>
    %24 = math.exp %23 : vector<1x128xf32>
    %cst_19 = arith.constant 1.000000e+00 : f32
    %25 = vector.broadcast %cst_19 : f32 to vector<1x128xf32>
    %26 = arith.addf %25, %24 : vector<1x128xf32>
    %27 = arith.divf %25, %26 : vector<1x128xf32>
    %c0_20 = arith.constant 0 : index
    %c0_21 = arith.constant 0 : index
    %28 = vector.load %arg11[%c0_20, %c0_21] : memref<128x128xbf16, #tpu.memory_space<vmem>>, vector<128x128xbf16>
    %29 = arith.truncf %17 : vector<1x128xf32> to vector<1x128xbf16>
    %cst_22 = arith.constant dense<0.000000e+00> : vector<1x128xf32>
    %30 = tpu.matmul %29, %28, %cst_22 {dimension_numbers = #tpu.dot_dimension_numbers<[1], [0], [0], [1], [0, 0, 1, 1], [], []>} : vector<1x128xbf16>, vector<128x128xbf16>, vector<1x128xf32> -> vector<1x128xf32>
    %c0_23 = arith.constant 0 : index
    %c0_24 = arith.constant 0 : index
    %31 = vector.load %arg12[%c0_23, %c0_24] : memref<128x128xbf16, #tpu.memory_space<vmem>>, vector<128x128xbf16>
    %32 = arith.truncf %27 : vector<1x128xf32> to vector<1x128xbf16>
    %cst_25 = arith.constant dense<0.000000e+00> : vector<1x128xf32>
    %33 = tpu.matmul %32, %31, %cst_25 {dimension_numbers = #tpu.dot_dimension_numbers<[1], [0], [0], [1], [0, 0, 1, 1], [], []>} : vector<1x128xbf16>, vector<128x128xbf16>, vector<1x128xf32> -> vector<1x128xf32>
    %34 = arith.addf %30, %33 : vector<1x128xf32>
    %c0_26 = arith.constant 0 : index
    %c0_27 = arith.constant 0 : index
    %35 = vector.load %arg13[%c0_26, %c0_27] : memref<1x128xf32, #tpu.memory_space<vmem>>, vector<1x128xf32>
    %36 = arith.addf %34, %35 : vector<1x128xf32>
    %cst_28 = arith.constant 0.000000e+00 : f32
    %37 = vector.broadcast %cst_28 : f32 to vector<1x128xf32>
    %38 = arith.maximumf %36, %37 : vector<1x128xf32>
    %c0_29 = arith.constant 0 : index
    %c0_30 = arith.constant 0 : index
    %39 = vector.load %arg14[%c0_29, %c0_30] : memref<128x128xbf16, #tpu.memory_space<vmem>>, vector<128x128xbf16>
    %40 = arith.truncf %38 : vector<1x128xf32> to vector<1x128xbf16>
    %cst_31 = arith.constant dense<0.000000e+00> : vector<1x128xf32>
    %41 = tpu.matmul %40, %39, %cst_31 {dimension_numbers = #tpu.dot_dimension_numbers<[1], [0], [0], [1], [0, 0, 1, 1], [], []>} : vector<1x128xbf16>, vector<128x128xbf16>, vector<1x128xf32> -> vector<1x128xf32>
    %c0_32 = arith.constant 0 : index
    %c0_33 = arith.constant 0 : index
    %42 = vector.load %arg15[%c0_32, %c0_33] : memref<1x128xf32, #tpu.memory_space<vmem>>, vector<1x128xf32>
    %43 = arith.addf %41, %42 : vector<1x128xf32>
    %c0_34 = arith.constant 0 : index
    %c0_35 = arith.constant 0 : index
    %44 = vector.load %arg2[%c0_34, %c0_35] : memref<8x1xi32, #tpu.memory_space<vmem>>, vector<8x1xi32>
    %45 = tpu.iota {dimensions = array<i32: 1>} : vector<8x128xi32>
    %46 = vector.broadcast %44 : vector<8x1xi32> to vector<8x128xi32>
    %47 = arith.cmpi eq, %46, %45 : vector<8x128xi32>
    %48 = arith.extui %47 : vector<8x128xi1> to vector<8x128xi32>
    %49 = arith.sitofp %48 : vector<8x128xi32> to vector<8x128xf32>
    %50 = arith.truncf %49 : vector<8x128xf32> to vector<8x128xbf16>
    %c0_36 = arith.constant 0 : index
    %c0_37 = arith.constant 0 : index
    %51 = vector.load %arg16[%c0_36, %c0_37] : memref<128x128xbf16, #tpu.memory_space<vmem>>, vector<128x128xbf16>
    %cst_38 = arith.constant dense<0.000000e+00> : vector<8x128xf32>
    %52 = tpu.matmul %50, %51, %cst_38 {dimension_numbers = #tpu.dot_dimension_numbers<[1], [0], [0], [1], [0, 0, 1, 1], [], []>} : vector<8x128xbf16>, vector<128x128xbf16>, vector<8x128xf32> -> vector<8x128xf32>
    %c0_39 = arith.constant 0 : index
    %c0_40 = arith.constant 0 : index
    %53 = vector.load %arg3[%c0_39, %c0_40] : memref<8x1xf32, #tpu.memory_space<vmem>>, vector<8x1xf32>
    %cst_41 = arith.constant 5.000000e-01 : f32
    %54 = vector.broadcast %cst_41 : f32 to vector<8x1xf32>
    %55 = arith.cmpf ogt, %53, %54 : vector<8x1xf32>
    %56 = vector.shape_cast %55 : vector<8x1xi1> to vector<8x1xi1>
    %57 = vector.broadcast %56 : vector<8x1xi1> to vector<8x128xi1>
    %58 = vector.shape_cast %43 : vector<1x128xf32> to vector<1x128xf32>
    %59 = vector.broadcast %58 : vector<1x128xf32> to vector<8x128xf32>
    %60 = arith.select %57, %59, %52 : vector<8x128xi1>, vector<8x128xf32>
    %61 = arith.mulf %60, %60 : vector<8x128xf32>
    %cst_42 = arith.constant dense<0.000000e+00> : vector<8xf32>
    %62 = vector.multi_reduction <add>, %61, %cst_42 [1] : vector<8x128xf32> to vector<8xf32>
    %63 = vector.shape_cast %62 : vector<8xf32> to vector<8x1xf32>
    %cst_43 = arith.constant 1.280000e+02 : f32
    %64 = vector.broadcast %cst_43 : f32 to vector<8x1xf32>
    %65 = arith.divf %63, %64 : vector<8x1xf32>
    %cst_44 = arith.constant 9.99999997E-7 : f32
    %66 = vector.broadcast %cst_44 : f32 to vector<8x1xf32>
    %67 = arith.addf %65, %66 : vector<8x1xf32>
    %68 = math.rsqrt %67 : vector<8x1xf32>
    %69 = vector.broadcast %68 : vector<8x1xf32> to vector<8x128xf32>
    %70 = arith.mulf %60, %69 : vector<8x128xf32>
    %71 = arith.truncf %70 : vector<8x128xf32> to vector<8x128xbf16>
    %c0_45 = arith.constant 0 : index
    %c0_46 = arith.constant 0 : index
    %72 = vector.load %arg17[%c0_45, %c0_46] : memref<128x384xbf16, #tpu.memory_space<vmem>>, vector<128x384xbf16>
    %cst_47 = arith.constant dense<0.000000e+00> : vector<8x384xf32>
    %73 = tpu.matmul %71, %72, %cst_47 {dimension_numbers = #tpu.dot_dimension_numbers<[1], [0], [0], [1], [0, 0, 1, 1], [], []>} : vector<8x128xbf16>, vector<128x384xbf16>, vector<8x384xf32> -> vector<8x384xf32>
    %74 = vector.extract_strided_slice %73 {offsets = [0, 0], sizes = [8, 128], strides = [1, 1]} : vector<8x384xf32> to vector<8x128xf32>
    %75 = vector.extract_strided_slice %73 {offsets = [0, 128], sizes = [8, 128], strides = [1, 1]} : vector<8x384xf32> to vector<8x128xf32>
    %76 = vector.extract_strided_slice %73 {offsets = [0, 256], sizes = [8, 128], strides = [1, 1]} : vector<8x384xf32> to vector<8x128xf32>
    %cst_48 = arith.constant 1.280000e+02 : f32
    %77 = math.sqrt %cst_48 : f32
    %cst_49 = arith.constant 1.000000e+00 : f32
    %78 = arith.divf %cst_49, %77 : f32
    %79 = arith.truncf %74 : vector<8x128xf32> to vector<8x128xbf16>
    %80 = arith.truncf %75 : vector<8x128xf32> to vector<8x128xbf16>
    %cst_50 = arith.constant dense<0.000000e+00> : vector<8x8xf32>
    %81 = tpu.matmul %79, %80, %cst_50 {dimension_numbers = #tpu.dot_dimension_numbers<[1], [1], [0], [0], [0, 0, 1, 0], [], []>} : vector<8x128xbf16>, vector<8x128xbf16>, vector<8x8xf32> -> vector<8x8xf32>
    %82 = vector.broadcast %78 : f32 to vector<8x8xf32>
    %83 = arith.mulf %81, %82 : vector<8x8xf32>
    %84 = tpu.iota {dimensions = array<i32: 0>} : vector<8x8xi32>
    %85 = tpu.iota {dimensions = array<i32: 1>} : vector<8x8xi32>
    %86 = arith.index_cast %arg0 : i32 to index
    %c0_51 = arith.constant 0 : index
    %87 = vector.load %arg4[%86, %c0_51] : memref<2x8xf32, #tpu.memory_space<vmem>>, vector<1x8xf32>
    %88 = arith.cmpi sle, %85, %84 : vector<8x8xi32>
    %cst_52 = arith.constant 5.000000e-01 : f32
    %89 = vector.broadcast %cst_52 : f32 to vector<1x8xf32>
    %90 = arith.cmpf ogt, %87, %89 : vector<1x8xf32>
    %91 = vector.broadcast %90 : vector<1x8xi1> to vector<8x8xi1>
    %92 = arith.andi %88, %91 : vector<8x8xi1>
    %cst_53 = arith.constant -1.000000e+09 : f32
    %93 = vector.broadcast %cst_53 : f32 to vector<8x8xf32>
    %94 = arith.select %92, %83, %93 : vector<8x8xi1>, vector<8x8xf32>
    %cst_54 = arith.constant dense<0xFF800000> : vector<8xf32>
    %95 = vector.multi_reduction <maximumf>, %94, %cst_54 [1] : vector<8x8xf32> to vector<8xf32>
    %cst_55 = arith.constant 0xFF800000 : f32
    %96 = vector.broadcast %cst_55 : f32 to vector<8xf32>
    %97 = arith.maximumf %96, %95 : vector<8xf32>
    %98 = vector.shape_cast %97 : vector<8xf32> to vector<8x1xf32>
    %99 = vector.broadcast %98 : vector<8x1xf32> to vector<8x8xf32>
    %100 = arith.subf %94, %99 : vector<8x8xf32>
    %101 = math.exp %100 : vector<8x8xf32>
    %cst_56 = arith.constant dense<0.000000e+00> : vector<8xf32>
    %102 = vector.multi_reduction <add>, %101, %cst_56 [1] : vector<8x8xf32> to vector<8xf32>
    %103 = vector.shape_cast %102 : vector<8xf32> to vector<8x1xf32>
    %104 = vector.broadcast %103 : vector<8x1xf32> to vector<8x8xf32>
    %105 = arith.divf %101, %104 : vector<8x8xf32>
    %106 = arith.truncf %105 : vector<8x8xf32> to vector<8x8xbf16>
    %107 = arith.truncf %76 : vector<8x128xf32> to vector<8x128xbf16>
    %cst_57 = arith.constant dense<0.000000e+00> : vector<8x128xf32>
    %108 = tpu.matmul %106, %107, %cst_57 {dimension_numbers = #tpu.dot_dimension_numbers<[1], [0], [0], [1], [0, 0, 1, 1], [], []>} : vector<8x8xbf16>, vector<8x128xbf16>, vector<8x128xf32> -> vector<8x128xf32>
    %c0_58 = arith.constant 0 : index
    %c0_59 = arith.constant 0 : index
    %109 = vector.load %arg18[%c0_58, %c0_59] : memref<128x128xbf16, #tpu.memory_space<vmem>>, vector<128x128xbf16>
    %110 = arith.truncf %108 : vector<8x128xf32> to vector<8x128xbf16>
    %cst_60 = arith.constant dense<0.000000e+00> : vector<8x128xf32>
    %111 = tpu.matmul %110, %109, %cst_60 {dimension_numbers = #tpu.dot_dimension_numbers<[1], [0], [0], [1], [0, 0, 1, 1], [], []>} : vector<8x128xbf16>, vector<128x128xbf16>, vector<8x128xf32> -> vector<8x128xf32>
    %112 = arith.addf %60, %111 : vector<8x128xf32>
    %113 = arith.mulf %112, %112 : vector<8x128xf32>
    %cst_61 = arith.constant dense<0.000000e+00> : vector<8xf32>
    %114 = vector.multi_reduction <add>, %113, %cst_61 [1] : vector<8x128xf32> to vector<8xf32>
    %115 = vector.shape_cast %114 : vector<8xf32> to vector<8x1xf32>
    %cst_62 = arith.constant 1.280000e+02 : f32
    %116 = vector.broadcast %cst_62 : f32 to vector<8x1xf32>
    %117 = arith.divf %115, %116 : vector<8x1xf32>
    %cst_63 = arith.constant 9.99999997E-7 : f32
    %118 = vector.broadcast %cst_63 : f32 to vector<8x1xf32>
    %119 = arith.addf %117, %118 : vector<8x1xf32>
    %120 = math.rsqrt %119 : vector<8x1xf32>
    %121 = vector.broadcast %120 : vector<8x1xf32> to vector<8x128xf32>
    %122 = arith.mulf %112, %121 : vector<8x128xf32>
    %c0_64 = arith.constant 0 : index
    %c0_65 = arith.constant 0 : index
    %123 = vector.load %arg19[%c0_64, %c0_65] : memref<128x256xbf16, #tpu.memory_space<vmem>>, vector<128x256xbf16>
    %124 = arith.truncf %122 : vector<8x128xf32> to vector<8x128xbf16>
    %cst_66 = arith.constant dense<0.000000e+00> : vector<8x256xf32>
    %125 = tpu.matmul %124, %123, %cst_66 {dimension_numbers = #tpu.dot_dimension_numbers<[1], [0], [0], [1], [0, 0, 1, 1], [], []>} : vector<8x128xbf16>, vector<128x256xbf16>, vector<8x256xf32> -> vector<8x256xf32>
    %c0_67 = arith.constant 0 : index
    %c0_68 = arith.constant 0 : index
    %126 = vector.load %arg20[%c0_67, %c0_68] : memref<1x256xf32, #tpu.memory_space<vmem>>, vector<1x256xf32>
    %127 = vector.broadcast %126 : vector<1x256xf32> to vector<8x256xf32>
    %128 = arith.addf %125, %127 : vector<8x256xf32>
    %129 = arith.mulf %128, %128 : vector<8x256xf32>
    %130 = arith.mulf %128, %129 : vector<8x256xf32>
    %cst_69 = arith.constant 4.471500e-02 : f32
    %131 = vector.broadcast %cst_69 : f32 to vector<8x256xf32>
    %132 = arith.mulf %131, %130 : vector<8x256xf32>
    %133 = arith.addf %128, %132 : vector<8x256xf32>
    %cst_70 = arith.constant 0.797884583 : f32
    %134 = vector.broadcast %cst_70 : f32 to vector<8x256xf32>
    %135 = arith.mulf %134, %133 : vector<8x256xf32>
    %136 = math.tanh %135 : vector<8x256xf32>
    %cst_71 = arith.constant 1.000000e+00 : f32
    %137 = vector.broadcast %cst_71 : f32 to vector<8x256xf32>
    %138 = arith.addf %137, %136 : vector<8x256xf32>
    %cst_72 = arith.constant 5.000000e-01 : f32
    %139 = vector.broadcast %cst_72 : f32 to vector<8x256xf32>
    %140 = arith.mulf %139, %138 : vector<8x256xf32>
    %141 = arith.mulf %128, %140 : vector<8x256xf32>
    %c0_73 = arith.constant 0 : index
    %c0_74 = arith.constant 0 : index
    %142 = vector.load %arg21[%c0_73, %c0_74] : memref<256x128xbf16, #tpu.memory_space<vmem>>, vector<256x128xbf16>
    %143 = arith.truncf %141 : vector<8x256xf32> to vector<8x256xbf16>
    %cst_75 = arith.constant dense<0.000000e+00> : vector<8x128xf32>
    %144 = tpu.matmul %143, %142, %cst_75 {dimension_numbers = #tpu.dot_dimension_numbers<[1], [0], [0], [1], [0, 0, 1, 1], [], []>} : vector<8x256xbf16>, vector<256x128xbf16>, vector<8x128xf32> -> vector<8x128xf32>
    %145 = arith.addf %112, %144 : vector<8x128xf32>
    %c0_76 = arith.constant 0 : index
    %c0_77 = arith.constant 0 : index
    %146 = vector.load %arg22[%c0_76, %c0_77] : memref<1x128xf32, #tpu.memory_space<vmem>>, vector<1x128xf32>
    %147 = vector.broadcast %146 : vector<1x128xf32> to vector<8x128xf32>
    %148 = arith.addf %145, %147 : vector<8x128xf32>
    %149 = arith.mulf %148, %148 : vector<8x128xf32>
    %cst_78 = arith.constant dense<0.000000e+00> : vector<8xf32>
    %150 = vector.multi_reduction <add>, %149, %cst_78 [1] : vector<8x128xf32> to vector<8xf32>
    %151 = vector.shape_cast %150 : vector<8xf32> to vector<8x1xf32>
    %cst_79 = arith.constant 1.280000e+02 : f32
    %152 = vector.broadcast %cst_79 : f32 to vector<8x1xf32>
    %153 = arith.divf %151, %152 : vector<8x1xf32>
    %cst_80 = arith.constant 9.99999997E-7 : f32
    %154 = vector.broadcast %cst_80 : f32 to vector<8x1xf32>
    %155 = arith.addf %153, %154 : vector<8x1xf32>
    %156 = math.rsqrt %155 : vector<8x1xf32>
    %157 = vector.broadcast %156 : vector<8x1xf32> to vector<8x128xf32>
    %158 = arith.mulf %148, %157 : vector<8x128xf32>
    %c0_81 = arith.constant 0 : index
    %c0_82 = arith.constant 0 : index
    %159 = vector.load %arg23[%c0_81, %c0_82] : memref<128x128xbf16, #tpu.memory_space<vmem>>, vector<128x128xbf16>
    %160 = arith.truncf %158 : vector<8x128xf32> to vector<8x128xbf16>
    %cst_83 = arith.constant dense<0.000000e+00> : vector<8x128xf32>
    %161 = tpu.matmul %160, %159, %cst_83 {dimension_numbers = #tpu.dot_dimension_numbers<[1], [0], [0], [1], [0, 0, 1, 1], [], []>} : vector<8x128xbf16>, vector<128x128xbf16>, vector<8x128xf32> -> vector<8x128xf32>
    %c0_84 = arith.constant 0 : index
    %c0_85 = arith.constant 0 : index
    %162 = vector.load %arg24[%c0_84, %c0_85] : memref<8x128xf32, #tpu.memory_space<vmem>>, vector<8x128xf32>
    tpu.vector_store %arg24[%c0_84, %c0_85], %161 {strides = array<i32>} : memref<8x128xf32, #tpu.memory_space<vmem>>, vector<8x128xf32>,
    return
  }
  func.func @transform_0(%arg0: i32) -> (i32, i32) {
    %c0_i32 = arith.constant 0 : i32
    %c0_i32_0 = arith.constant 0 : i32
    return %arg0, %c0_i32 : i32, i32
  }
  func.func @transform_1(%arg0: i32) -> (i32, i32) {
    %c0_i32 = arith.constant 0 : i32
    %c0_i32_0 = arith.constant 0 : i32
    return %arg0, %c0_i32 : i32, i32
  }
  func.func @transform_2(%arg0: i32) -> (i32, i32) {
    %c0_i32 = arith.constant 0 : i32
    %c0_i32_0 = arith.constant 0 : i32
    return %arg0, %c0_i32 : i32, i32
  }
  func.func @transform_3(%arg0: i32) -> (i32, i32) {
    %c0_i32 = arith.constant 0 : i32
    %c0_i32_0 = arith.constant 0 : i32
    %c0_i32_1 = arith.constant 0 : i32
    return %c0_i32, %c0_i32_0 : i32, i32
  }
  func.func @transform_4(%arg0: i32) -> (i32, i32) {
    %c0_i32 = arith.constant 0 : i32
    %c0_i32_0 = arith.constant 0 : i32
    %c0_i32_1 = arith.constant 0 : i32
    return %c0_i32, %c0_i32_0 : i32, i32
  }
  func.func @transform_5(%arg0: i32) -> (i32, i32) {
    %c0_i32 = arith.constant 0 : i32
    %c0_i32_0 = arith.constant 0 : i32
    %c0_i32_1 = arith.constant 0 : i32
    return %c0_i32, %c0_i32_0 : i32, i32
  }
  func.func @transform_6(%arg0: i32) -> (i32, i32) {
    %c0_i32 = arith.constant 0 : i32
    %c0_i32_0 = arith.constant 0 : i32
    %c0_i32_1 = arith.constant 0 : i32
    return %c0_i32, %c0_i32_0 : i32, i32
  }
  func.func @transform_7(%arg0: i32) -> (i32, i32) {
    %c0_i32 = arith.constant 0 : i32
    %c0_i32_0 = arith.constant 0 : i32
    %c0_i32_1 = arith.constant 0 : i32
    return %c0_i32, %c0_i32_0 : i32, i32
  }
  func.func @transform_8(%arg0: i32) -> (i32, i32) {
    %c0_i32 = arith.constant 0 : i32
    %c0_i32_0 = arith.constant 0 : i32
    %c0_i32_1 = arith.constant 0 : i32
    return %c0_i32, %c0_i32_0 : i32, i32
  }
  func.func @transform_9(%arg0: i32) -> (i32, i32) {
    %c0_i32 = arith.constant 0 : i32
    %c0_i32_0 = arith.constant 0 : i32
    %c0_i32_1 = arith.constant 0 : i32
    return %c0_i32, %c0_i32_0 : i32, i32
  }
  func.func @transform_10(%arg0: i32) -> (i32, i32) {
    %c0_i32 = arith.constant 0 : i32
    %c0_i32_0 = arith.constant 0 : i32
    %c0_i32_1 = arith.constant 0 : i32
    return %c0_i32, %c0_i32_0 : i32, i32
  }
  func.func @transform_11(%arg0: i32) -> (i32, i32) {
    %c0_i32 = arith.constant 0 : i32
    %c0_i32_0 = arith.constant 0 : i32
    %c0_i32_1 = arith.constant 0 : i32
    return %c0_i32, %c0_i32_0 : i32, i32
  }
  func.func @transform_12(%arg0: i32) -> (i32, i32) {
    %c0_i32 = arith.constant 0 : i32
    %c0_i32_0 = arith.constant 0 : i32
    %c0_i32_1 = arith.constant 0 : i32
    return %c0_i32, %c0_i32_0 : i32, i32
  }
  func.func @transform_13(%arg0: i32) -> (i32, i32) {
    %c0_i32 = arith.constant 0 : i32
    %c0_i32_0 = arith.constant 0 : i32
    %c0_i32_1 = arith.constant 0 : i32
    return %c0_i32, %c0_i32_0 : i32, i32
  }
  func.func @transform_14(%arg0: i32) -> (i32, i32) {
    %c0_i32 = arith.constant 0 : i32
    %c0_i32_0 = arith.constant 0 : i32
    %c0_i32_1 = arith.constant 0 : i32
    return %c0_i32, %c0_i32_0 : i32, i32
  }
  func.func @transform_15(%arg0: i32) -> (i32, i32) {
    %c0_i32 = arith.constant 0 : i32
    %c0_i32_0 = arith.constant 0 : i32
    %c0_i32_1 = arith.constant 0 : i32
    return %c0_i32, %c0_i32_0 : i32, i32
  }
  func.func @transform_16(%arg0: i32) -> (i32, i32) {
    %c0_i32 = arith.constant 0 : i32
    %c0_i32_0 = arith.constant 0 : i32
    %c0_i32_1 = arith.constant 0 : i32
    return %c0_i32, %c0_i32_0 : i32, i32
  }
  func.func @transform_17(%arg0: i32) -> (i32, i32) {
    %c0_i32 = arith.constant 0 : i32
    %c0_i32_0 = arith.constant 0 : i32
    %c0_i32_1 = arith.constant 0 : i32
    return %c0_i32, %c0_i32_0 : i32, i32
  }
  func.func @transform_18(%arg0: i32) -> (i32, i32) {
    %c0_i32 = arith.constant 0 : i32
    %c0_i32_0 = arith.constant 0 : i32
    %c0_i32_1 = arith.constant 0 : i32
    return %c0_i32, %c0_i32_0 : i32, i32
  }
  func.func @transform_19(%arg0: i32) -> (i32, i32) {
    %c0_i32 = arith.constant 0 : i32
    %c0_i32_0 = arith.constant 0 : i32
    %c0_i32_1 = arith.constant 0 : i32
    return %c0_i32, %c0_i32_0 : i32, i32
  }
  func.func @transform_20(%arg0: i32) -> (i32, i32) {
    %c0_i32 = arith.constant 0 : i32
    %c0_i32_0 = arith.constant 0 : i32
    %c0_i32_1 = arith.constant 0 : i32
    return %c0_i32, %c0_i32_0 : i32, i32
  }
  func.func @transform_21(%arg0: i32) -> (i32, i32) {
    %c0_i32 = arith.constant 0 : i32
    %c0_i32_0 = arith.constant 0 : i32
    %c0_i32_1 = arith.constant 0 : i32
    return %c0_i32, %c0_i32_0 : i32, i32
  }
  func.func @transform_22(%arg0: i32) -> (i32, i32) {
    %c0_i32 = arith.constant 0 : i32
    %c0_i32_0 = arith.constant 0 : i32
    %c0_i32_1 = arith.constant 0 : i32
    return %c0_i32, %c0_i32_0 : i32, i32
  }
  func.func @transform_23(%arg0: i32) -> (i32, i32) {
    %c0_i32 = arith.constant 0 : i32
    %c0_i32_0 = arith.constant 0 : i32
    return %arg0, %c0_i32 : i32, i32
  }
}

</mosaic_0001>

<bundles_post_ra>
// kernel: car_llava_phase1_forward.1
= control target key start
LH: loop header
LB: loop body
LE: loop exit
PB: predicated region body
PF: predicated region fallthrough
CT: control target
= control target key end

     0   :  { %s3964_s0 = inlined_call_operand.vmem [shape: bf16[512,128], index: 0, kind: input, shape index: {}]   ;;  %s3965_s1 = inlined_call_operand.vmem [shape: s32[16,1], index: 1, kind: input, shape index: {}]   ;;  %s3966_s2 = inlined_call_operand.vmem [shape: f32[16,1], index: 2, kind: input, shape index: {}]   ;;  %s3967_s3 = inlined_call_operand.vmem [shape: f32[2,8], index: 3, kind: input, shape index: {}]   ;;  %s3968_s4 = inlined_call_operand.vmem [shape: bf16[128,32], index: 4, kind: input, shape index: {}]   ;;  %s3969_s5 = inlined_call_operand.vmem [shape: f32[1,32], index: 5, kind: input, shape index: {}]   ;;  %s3970_s6 = inlined_call_operand.vmem [shape: bf16[32,128], index: 6, kind: input, shape index: {}]   ;;  %s3971_s7 = inlined_call_operand.vmem [shape: f32[1,128], index: 7, kind: input, shape index: {}]   ;;  %s3972_s8 = inlined_call_operand.vmem [shape: bf16[128,128], index: 8, kind: input, shape index: {}]   ;;  %s3973_s9 = inlined_call_operand.vmem [shape: f32[1,128], index: 9, kind: input, shape index: {}]   ;;  %s3974_s10 = inlined_call_operand.vmem [shape: bf16[128,128], index: 10, kind: input, shape index: {}]   ;;  %s3975_s11 = inlined_call_operand.vmem [shape: bf16[128,128], index: 11, kind: input, shape index: {}]   ;;  %s3976_s12 = inlined_call_operand.vmem [shape: f32[1,128], index: 12, kind: input, shape index: {}]   ;;  %s3977_s13 = inlined_call_operand.vmem [shape: bf16[128,128], index: 13, kind: input, shape index: {}]   ;;  %s3978_s14 = inlined_call_operand.vmem [shape: f32[1,128], index: 14, kind: input, shape index: {}]   ;;  %s3979_s15 = inlined_call_operand.vmem [shape: bf16[128,128], index: 15, kind: input, shape index: {}]   ;;  %s3980_s16 = inlined_call_operand.vmem [shape: bf16[128,384], index: 16, kind: input, shape index: {}]   ;;  %s3981_s17 = inlined_call_operand.vmem [shape: bf16[128,128], index: 17, kind: input, shape index: {}]   ;;  %s3982_s18 = inlined_call_operand.vmem [shape: bf16[128,256], index: 18, kind: input, shape index: {}]   ;;  %s3983_s19 = inlined_call_operand.vmem [shape: f32[1,256], index: 19, kind: input, shape index: {}]   ;;  %s3984_s20 = inlined_call_operand.vmem [shape: bf16[256,128], index: 20, kind: input, shape index: {}]   ;;  %s3985_s21 = inlined_call_operand.vmem [shape: f32[1,128], index: 21, kind: input, shape index: {}]   ;;  %s3986_s22 = inlined_call_operand.vmem [shape: bf16[128,128], index: 22, kind: input, shape index: {}]   ;;  %s3987_s23 = inlined_call_operand.vmem [shape: f32[16,128], index: 23, kind: output, shape index: {}]  }
   0x1   :  { %3991 = sst [smem:[#allocation2_spill]] %s3964_s0 }
   0x2   :  { %3992 = sst [smem:[#allocation3_spill]] %s3965_s1 }
   0x3   :  { %3993 = sst [smem:[#allocation4_spill]] %s3966_s2 }
   0x4   :  { %3994 = sst [smem:[#allocation5_spill]] %s3967_s3 }
   0x5   :  { %3995 = sst [smem:[#allocation6_spill]] %s3968_s4  ;;  %s3330_s4 = smov 0  }
   0x6   :  { %3996 = sst [smem:[#allocation7_spill]] %s3969_s5 }
   0x7   :  { %3997 = sst [smem:[#allocation8_spill]] %s3970_s6 }
   0x8   :  { %3998 = sst [smem:[#allocation9_spill]] %s3971_s7 }
   0x9   :  { %3999 = sst [smem:[#allocation10_spill]] %s3972_s8 }
   0xa   :  { %4000 = sst [smem:[#allocation11_spill]] %s3974_s10 }
   0xb LB: > { %s3336_s30 = sadd.s32 4294967295, %s3204_s4   ;;  %p2451_p0 = scmp.ge.s32.totalorder %s3204_s4, 1  ;;  %s3204_s4 = sphi %s3330_s4, %s33_s4  }
   0xc   : > { %p656_p1 = scmp.lt.s32.totalorder %s3204_s4, 3 }
   0xe   : > { %p657_p2 = pnand %p2451_p0, %p656_p1 }
   0xf   : > { %s4001_s5 = sld [smem:[#allocation6_spill]] (!%p657_p2)  ;;  %s2452_s28 = sshll.u32 (!%p657_p2), %s3336_s30, 5 }
  0x10   : > { %660 = sbr.rel (%p657_p2) target bundleno = 2760 (0xac8), region = 112  ;;  %p728_p3 = scmp.lt.s32.totalorder (!%p657_p2), %s2452_s28, 63 }
  0x11   : > { %s4002_s29 = sld [smem:[#allocation2_spill]] (!%p657_p2)  ;;  %p733_p4 = scmp.lt.s32.totalorder (!%p657_p2), %s3336_s30, 1 }
  0x12   : > { %s4003_s24 = sld [smem:[#allocation7_spill]] (!%p657_p2) }
  0x13   : > { %s4005_s8 = sld [smem:[#allocation10_spill]] (!%p657_p2) }
  0x14   : > { %s4006_s10 = sld [smem:[#allocation11_spill]] (!%p657_p2) }
  0x15   : > { %v3040_v0 = vld [vmem:[%s4001_s5 + $0x38] sm:$0xff]  ;;  %v3039_v1 = vld [vmem:[%s4001_s5 + $0x30] sm:$0xff]  ;;  %v3038_v2 = vld [vmem:[%s4001_s5 + $0x28] sm:$0xff]  ;;  %s4012_s28 = smov (!%p728_p3, %s2452_s28), 63  ;;  %vm1124_vm0 = vcmask 261120   ;;  %s4007_s7 = sld [smem:[#allocation9_spill]] }
  0x16   : > { %943 = vmatpush.bf16.msra.mxu0 %v3040_v0  ;;  %3155 = vmatpush.bf16.msra.mxu2 %v3040_v0  ;;  %v3037_v3 = vld [vmem:[%s4001_s5 + $0x20] sm:$0xff]  ;;  %v3036_v4 = vld [vmem:[%s4001_s5 + $0x18] sm:$0xff]  ;;  %v3035_v5 = vld [vmem:[%s4001_s5 + $0x10] sm:$0xff]  ;;  %s2453_s26 = sshll.u32 %s4012_s28, 2  ;;  %vm1853_vm13 = vcmask 1043456   ;;  %s4010_s6 = sld [smem:[#allocation5_spill]] }
  0x17   : > { %v3034_v6 = vld [vmem:[%s4001_s5 + $0x8] sm:$0xff]  ;;  %v3033_v7 = vld [vmem:[%s4001_s5] sm:$0xff]  ;;  %s3368_s3 = scalar_lea.vmem %s4002_s29, %s2453_s26  ;;  %s4004_s26 = sld [smem:[#allocation8_spill]] }
  0x18   : > { %v3017_v8 = vld [vmem:[%s3368_s3] sm:$0xff]  ;;  %v3018_v10 = vld [vmem:[%s3368_s3 + $0x8] sm:$0xff]  ;;  %v3019_v12 = vld [vmem:[%s3368_s3 + $0x10] sm:$0xff]  ;;  %s4008_s29 = sld [smem:[#allocation3_spill]] }
  0x19   : > { %v3029_v9 = vld [vmem:[%s3368_s3 + $0x60] sm:$0xff]  ;;  %v3030_v11 = vld [vmem:[%s3368_s3 + $0x68] sm:$0xff]  ;;  %v3031_v13 = vld [vmem:[%s3368_s3 + $0x70] sm:$0xff] }
  0x1a   : > { %944 = vmatpush.bf16.msra.mxu0 %v3039_v1  ;;  %3156 = vmatpush.bf16.msra.mxu2 %v3039_v1  ;;  %v3020_v14 = vld [vmem:[%s3368_s3 + $0x18] sm:$0xff]  ;;  %v3021_v16 = vld [vmem:[%s3368_s3 + $0x20] sm:$0xff]  ;;  %v3022_v17 = vld [vmem:[%s3368_s3 + $0x28] sm:$0xff] }
  0x1b   : > { %v3032_v15 = vld [vmem:[%s3368_s3 + $0x78] sm:$0xff]  ;;  %v3023_v18 = vld [vmem:[%s3368_s3 + $0x30] sm:$0xff]  ;;  %v3025_v20 = vld [vmem:[%s3368_s3 + $0x40] sm:$0xff] }
  0x1c   : > { %v3024_v19 = vld [vmem:[%s3368_s3 + $0x38] sm:$0xff]  ;;  %v3386_v22 = vld [vmem:[%s4003_s24] ss:$0 sm:$0xff]  ;;  %v3026_v31 = vld [vmem:[%s3368_s3 + $0x48] sm:$0xff] }
  0x1d   : > { %v3027_v41 = vld [vmem:[%s3368_s3 + $0x50] sm:$0xff]  ;;  %v3028_v51 = vld [vmem:[%s3368_s3 + $0x58] sm:$0xff]  ;;  %s734_s3 = scalar_select %p733_p4, %s3336_s30, 1 }
  0x1e   : > { %945 = vmatpush.bf16.msra.mxu0 %v3038_v2  ;;  %3157 = vmatpush.bf16.msra.mxu2 %v3038_v2 }
  0x1f   : > { %s3515_s1 = sshll.u32 %s734_s3, 3 }
  0x20   : > { %s736_s5 = scalar_lea.vmem %s4008_s29, %s3515_s1  ;;  %s744_s3 = scalar_lea.vmem %s3987_s23, %s3515_s1 }
  0x22   : > { %946 = vmatpush.bf16.msra.mxu0 %v3037_v3  ;;  %3158 = vmatpush.bf16.msra.mxu2 %v3037_v3 }
  0x26   : > { %947 = vmatpush.bf16.msra.mxu0 %v3036_v4  ;;  %3159 = vmatpush.bf16.msra.mxu2 %v3036_v4 }
  0x2a   : > { %948 = vmatpush.bf16.msra.mxu0 %v3035_v5  ;;  %3160 = vmatpush.bf16.msra.mxu2 %v3035_v5 }
  0x2e   : > { %949 = vmatpush.bf16.msra.mxu0 %v3034_v6  ;;  %3161 = vmatpush.bf16.msra.mxu2 %v3034_v6 }
  0x32   : > { %950 = vmatpush.bf16.msra.mxu0 %v3033_v7  ;;  %3162 = vmatpush.bf16.msra.mxu2 %v3033_v7 }
  0x35   : > { %951 = vmatmul.bf16.vlgmr.msra.gmra.mxu0 %v3017_v8  ;;  %1011 = vmatmul.bf16.vlgmr.msra.gmra.mxu2 %v3029_v9 }
  0x45   : > { %956 = vmatmul.bf16.gmra.mxu0 %v3018_v10  ;;  %1016 = vmatmul.bf16.gmra.mxu2 %v3030_v11 }
  0x55   : > { %961 = vmatmul.bf16.gmra.mxu0 %v3019_v12  ;;  %1021 = vmatmul.bf16.gmra.mxu2 %v3031_v13 }
  0x65   : > { %966 = vmatmul.bf16.gmra.mxu0 %v3020_v14  ;;  %1026 = vmatmul.bf16.gmra.mxu2 %v3032_v15 }
  0x75   : > { %971 = vmatmul.bf16.gmra.mxu0 %v3021_v16 }
  0x85   : > { %976 = vmatmul.bf16.gmra.mxu0 %v3022_v17 }
  0x95   : > { %981 = vmatmul.bf16.gmra.mxu0 %v3023_v18 }
  0xa5   : > { %986 = vmatmul.bf16.gmra.mxu0 %v3024_v19 }
  0xb2   : > { %v952_v21 = vpop.f32.mrf.mxu0 }
  0xb3   : > { %v953_v24 = vadd.f32 %v3386_v22, %v952_v21 }
  0xb5   : > { %991 = vmatmul.bf16.gmra.mxu0 %v3025_v20  ;;  %v1032_v27 = vmax.f32 %v953_v24, 0.0 }
  0xb8   : > { %v1012_v23 = vpop.f32.mrf.mxu2 }
  0xb9   : > { %v1013_v9 = vadd.f32 %v3386_v22, %v1012_v23 }
  0xba   : > { %v954_v25 = vpop.f32.mrf.mxu0 }
  0xbb   : > { %v955_v26 = vadd.f32 %v3386_v22, %v954_v25  ;;  %v1056_v15 = vmax.f32 %v1013_v9, 0.0 }
  0xbd   : > { %v1033_v28 = vmax.f32 %v955_v26, 0.0 }
  0xbf   : > { %v3390_v29 = vpack.c.bf16 %v1033_v28, %v1032_v27 }
  0xc0   : > { %v1014_v30 = vpop.f32.mrf.mxu2 }
  0xc1   : > { %v1015_v10 = vadd.f32 %v3386_v22, %v1014_v30 }
  0xc2   : > { %v957_v32 = vpop.f32.mrf.mxu0 }
  0xc3   : > { %v958_v34 = vadd.f32 %v3386_v22, %v957_v32  ;;  %v1057_v16 = vmax.f32 %v1015_v10, 0.0 }
  0xc5   : > { %996 = vmatmul.bf16.gmra.mxu0 %v3026_v31  ;;  %v1034_v37 = vmax.f32 %v958_v34, 0.0  ;;  %v1076_v18 = vpack.c.bf16 %v1057_v16, %v1056_v15  ;;  %v3049_v15 = vld [vmem:[%s4005_s8 + $0x30] sm:$0xff]  ;;  %v3048_v16 = vld [vmem:[%s4005_s8 + $0x28] sm:$0xff] }
  0xc8   : > { %v1017_v33 = vpop.f32.mrf.mxu2 }
  0xc9   : > { %v1018_v2 = vadd.f32 %v3386_v22, %v1017_v33 }
  0xca   : > { %v959_v35 = vpop.f32.mrf.mxu0 }
  0xcb   : > { %v960_v36 = vadd.f32 %v3386_v22, %v959_v35  ;;  %v1058_v11 = vmax.f32 %v1018_v2, 0.0 }
  0xcd   : > { %v1035_v38 = vmax.f32 %v960_v36, 0.0 }
  0xcf   : > { %v3395_v39 = vpack.c.bf16 %v1035_v38, %v1034_v37 }
  0xd0   : > { %v1019_v40 = vpop.f32.mrf.mxu2 }
  0xd1   : > { %v1020_v4 = vadd.f32 %v3386_v22, %v1019_v40 }
  0xd2   : > { %v962_v42 = vpop.f32.mrf.mxu0 }
  0xd3   : > { %v963_v44 = vadd.f32 %v3386_v22, %v962_v42  ;;  %v1059_v12 = vmax.f32 %v1020_v4, 0.0 }
  0xd5   : > { %1001 = vmatmul.bf16.gmra.mxu0 %v3027_v41  ;;  %v1036_v47 = vmax.f32 %v963_v44, 0.0  ;;  %v1077_v17 = vpack.c.bf16 %v1059_v12, %v1058_v11 }
  0xd8   : > { %v1022_v43 = vpop.f32.mrf.mxu2 }
  0xd9   : > { %v1023_v60 = vadd.f32 %v3386_v22, %v1022_v43 }
  0xda   : > { %v964_v45 = vpop.f32.mrf.mxu0 }
  0xdb   : > { %v965_v46 = vadd.f32 %v3386_v22, %v964_v45  ;;  %v1060_v5 = vmax.f32 %v1023_v60, 0.0 }
  0xdd   : > { %v1037_v48 = vmax.f32 %v965_v46, 0.0 }
  0xdf   : > { %v3400_v49 = vpack.c.bf16 %v1037_v48, %v1036_v47 }
  0xe0   : > { %v1024_v50 = vpop.f32.mrf.mxu2 }
  0xe1   : > { %v1025_v61 = vadd.f32 %v3386_v22, %v1024_v50 }
  0xe2   : > { %v967_v52 = vpop.f32.mrf.mxu0 }
  0xe3   : > { %v968_v54 = vadd.f32 %v3386_v22, %v967_v52  ;;  %v1061_v6 = vmax.f32 %v1025_v61, 0.0 }
  0xe5   : > { %1006 = vmatmul.bf16.gmra.mxu0 %v3028_v51  ;;  %v1038_v57 = vmax.f32 %v968_v54, 0.0  ;;  %v1078_v13 = vpack.c.bf16 %v1061_v6, %v1060_v5 }
  0xe8   : > { %v1027_v53 = vpop.f32.mrf.mxu2 }
  0xe9   : > { %v1028_v59 = vadd.f32 %v3386_v22, %v1027_v53 }
  0xea   : > { %v969_v55 = vpop.f32.mrf.mxu0 }
  0xeb   : > { %v970_v56 = vadd.f32 %v3386_v22, %v969_v55  ;;  %v1062_v0 = vmax.f32 %v1028_v59, 0.0  ;;  %v3206_v55 = vmov 998259584  }
  0xed   : > { %v1039_v58 = vmax.f32 %v970_v56, 0.0  ;;  %v3042_v56 = vld [vmem:[%s4004_s26 + $0x8] sm:$0xff] }
  0xef   : > { %v1067_v62 = vpack.c.bf16 %v1039_v58, %v1038_v57 }
  0xf0   : > { %v1029_v63 = vpop.f32.mrf.mxu2 }
  0xf1   : > { %v1030_v1 = vadd.f32 %v3386_v22, %v1029_v63 }
  0xf2   : > { %v972_v3 = vpop.f32.mrf.mxu0 }
  0xf3   : > { %v1063_v7 = vmax.f32 %v1030_v1, 0.0  ;;  %v973_v43 = vadd.f32 %v3386_v22, %v972_v3 }
  0xf5   : > { %v1079_v8 = vpack.c.bf16 %v1063_v7, %v1062_v0  ;;  %v1040_v47 = vmax.f32 %v973_v43, 0.0  ;;  %v3066_v43 = vld [vmem:[%s3975_s11 + $0x38] sm:$0xff] }
  0xf7   : > { %1093 = vmatpush.bf16.msrb.mxu2 %v1079_v8 }
  0xfa   : > { %v974_v14 = vpop.f32.mrf.mxu0 }
  0xfb   : > { %1094 = vmatpush.bf16.msrb.mxu2 %v1078_v13  ;;  %v975_v40 = vadd.f32 %v3386_v22, %v974_v14  ;;  %v3041_v13 = vld [vmem:[%s4004_s26] sm:$0xff] }
  0xfd   : > { %v1041_v45 = vmax.f32 %v975_v40, 0.0 }
  0xff   : > { %1095 = vmatpush.bf16.msrb.mxu2 %v1077_v17  ;;  %v1068_v50 = vpack.c.bf16 %v1041_v45, %v1040_v47  ;;  %v3047_v17 = vld [vmem:[%s4005_s8 + $0x20] sm:$0xff]  ;;  %v3064_v45 = vld [vmem:[%s3975_s11 + $0x28] sm:$0xff]  ;;  %v3062_v47 = vld [vmem:[%s3975_s11 + $0x18] sm:$0xff] }
 0x102   : > { %v977_v19 = vpop.f32.mrf.mxu0 }
 0x103   : > { %1096 = vmatpush.bf16.msrb.mxu2 %v1076_v18  ;;  %v978_v36 = vadd.f32 %v3386_v22, %v977_v19  ;;  %v3046_v18 = vld [vmem:[%s4005_s8 + $0x18] sm:$0xff]  ;;  %v3045_v19 = vld [vmem:[%s4005_s8 + $0x10] sm:$0xff] }
 0x105   : > { %v1042_v44 = vmax.f32 %v978_v36, 0.0  ;;  %v1111_v36 = vld [vmem:[%s4007_s7] sm:$0x1] }
 0x10a   : > { %v979_v20 = vpop.f32.mrf.mxu0 }
 0x10b   : > { %v980_v33 = vadd.f32 %v3386_v22, %v979_v20  ;;  %v3044_v20 = vld [vmem:[%s4005_s8 + $0x8] sm:$0xff] }
 0x10d   : > { %v1043_v41 = vmax.f32 %v980_v33, 0.0  ;;  %v3053_v33 = vld [vmem:[%s4006_s10 + $0x10] sm:$0xff] }
 0x10f   : > { %v1069_v46 = vpack.c.bf16 %v1043_v41, %v1042_v44  ;;  %v3065_v44 = vld [vmem:[%s3975_s11 + $0x30] sm:$0xff] }
 0x112   : > { %v982_v21 = vpop.f32.mrf.mxu0 }
 0x113   : > { %v983_v30 = vadd.f32 %v3386_v22, %v982_v21 }
 0x115   : > { %v1044_v37 = vmax.f32 %v983_v30, 0.0  ;;  %v3056_v30 = vld [vmem:[%s4006_s10 + $0x28] sm:$0xff] }
 0x11a   : > { %v984_v24 = vpop.f32.mrf.mxu0 }
 0x11b   : > { %v985_v27 = vadd.f32 %v3386_v22, %v984_v24 }
 0x11d   : > { %v1045_v34 = vmax.f32 %v985_v27, 0.0  ;;  %v3057_v27 = vld [vmem:[%s4006_s10 + $0x30] sm:$0xff] }
 0x11f   : > { %v1070_v42 = vpack.c.bf16 %v1045_v34, %v1044_v37  ;;  %v3052_v34 = vld [vmem:[%s4006_s10 + $0x8] sm:$0xff] }
 0x122   : > { %v987_v25 = vpop.f32.mrf.mxu0 }
 0x123   : > { %v988_v23 = vadd.f32 %v3386_v22, %v987_v25  ;;  %v3043_v25 = vld [vmem:[%s4005_s8] sm:$0xff] }
 0x125   : > { %v1046_v31 = vmax.f32 %v988_v23, 0.0 }
 0x12a   : > { %v989_v26 = vpop.f32.mrf.mxu0 }
 0x12b   : > { %v990_v28 = vadd.f32 %v3386_v22, %v989_v26  ;;  %v3058_v26 = vld [vmem:[%s4006_s10 + $0x38] sm:$0xff] }
 0x12d   : > { %v1047_v32 = vmax.f32 %v990_v28, 0.0 }
 0x12f   : > { %v1071_v35 = vpack.c.bf16 %v1047_v32, %v1046_v31  ;;  %v3055_v31 = vld [vmem:[%s4006_s10 + $0x20] sm:$0xff]  ;;  %v3054_v32 = vld [vmem:[%s4006_s10 + $0x18] sm:$0xff] }
 0x131   : > { %1080 = vmatpush.bf16.msra.mxu1 %v1071_v35  ;;  %v3051_v35 = vld [vmem:[%s4006_s10] sm:$0xff] }
 0x132   : > { %v992_v38 = vpop.f32.mrf.mxu0 }
 0x133   : > { %v993_v6 = vadd.f32 %v3386_v22, %v992_v38 }
 0x135   : > { %1081 = vmatpush.bf16.msra.mxu1 %v1070_v42  ;;  %v1048_v10 = vmax.f32 %v993_v6, 0.0  ;;  %v3069_v6 = vld [vmem:[%s3977_s13 + $0x10] sm:$0xff] }
 0x139   : > { %1082 = vmatpush.bf16.msra.mxu1 %v1069_v46  ;;  %v3063_v46 = vld [vmem:[%s3975_s11 + $0x20] sm:$0xff] }
 0x13a   : > { %v994_v48 = vpop.f32.mrf.mxu0 }
 0x13b   : > { %v995_v3 = vadd.f32 %v3386_v22, %v994_v48  ;;  %v3061_v48 = vld [vmem:[%s3975_s11 + $0x10] sm:$0xff] }
 0x13d   : > { %1083 = vmatpush.bf16.msra.mxu1 %v1068_v50  ;;  %v1049_v8 = vmax.f32 %v995_v3, 0.0  ;;  %v3060_v50 = vld [vmem:[%s3975_s11 + $0x8] sm:$0xff] }
 0x13f   : > { %v1072_v11 = vpack.c.bf16 %v1049_v8, %v1048_v10 }
 0x141   : > { %1084 = vmatpush.bf16.msra.mxu1 %v1067_v62 }
 0x142   : > { %v997_v51 = vpop.f32.mrf.mxu0 }
 0x143   : > { %v998_v1 = vadd.f32 %v3386_v22, %v997_v51  ;;  %v3059_v51 = vld [vmem:[%s3975_s11] sm:$0xff] }
 0x145   : > { %1085 = vmatpush.bf16.msra.mxu1 %v3400_v49  ;;  %v1050_v7 = vmax.f32 %v998_v1, 0.0 }
 0x149   : > { %1086 = vmatpush.bf16.msra.mxu1 %v3395_v39 }
 0x14a   : > { %v999_v52 = vpop.f32.mrf.mxu0 }
 0x14b   : > { %v1000_v62 = vadd.f32 %v3386_v22, %v999_v52  ;;  %v1159_v52 = vld [vmem:[%s3973_s9] sm:$0x1] }
 0x14d   : > { %1087 = vmatpush.bf16.msra.mxu1 %v3390_v29  ;;  %v1051_v4 = vmax.f32 %v1000_v62, 0.0  ;;  %v3072_v62 = vld [vmem:[%s3977_s13 + $0x28] sm:$0xff] }
 0x14f   : > { %v1073_v9 = vpack.c.bf16 %v1051_v4, %v1050_v7  ;;  %v3070_v4 = vld [vmem:[%s3977_s13 + $0x18] sm:$0xff] }
 0x150   : > { %1088 = vmatmul.bf16.vlgmr.msra.gmra.mxu1 %v3206_v55 }
 0x151   : > { %1134 = vmatpush.bf16.msrb.mxu1 %v3042_v56  ;;  %v3207_v56 = vmov 0  }
 0x152   : > { %v1002_v53 = vpop.f32.mrf.mxu0  ;;  %3175 = vset.pattern.permute.xlu0 %v3207_v56 }
 0x153   : > { %v1003_v60 = vadd.f32 %v3386_v22, %v1002_v53 }
 0x155   : > { %v1052_v2 = vmax.f32 %v1003_v60, 0.0  ;;  %1135 = vmatpush.bf16.msrb.mxu1 %v3041_v13  ;;  %v3081_v60 = vld [vmem:[%s3979_s15 + $0x30] sm:$0xff] }
 0x159   : > { %1321 = vmatpush.bf16.msra.mxu1 %v3066_v43 }
 0x15a   : > { %v1004_v54 = vpop.f32.mrf.mxu0 }
 0x15b   : > { %v1005_v49 = vadd.f32 %v3386_v22, %v1004_v54 }
 0x15d   : > { %v1053_v63 = vmax.f32 %v1005_v49, 0.0  ;;  %1322 = vmatpush.bf16.msra.mxu1 %v3065_v44  ;;  %v3082_v49 = vld [vmem:[%s3979_s15 + $0x38] sm:$0xff] }
 0x15e   : > { %v2814_v44 = vld [vmem:[%s3980_s16 + $0xb4] sm:$0xf0] }
 0x15f   : > { %v1074_v5 = vpack.c.bf16 %v1053_v63, %v1052_v2  ;;  %v3080_v63 = vld [vmem:[%s3979_s15 + $0x28] sm:$0xff]  ;;  %v3071_v2 = vld [vmem:[%s3977_s13 + $0x20] sm:$0xff] }
 0x161   : > { %1323 = vmatpush.bf16.msra.mxu1 %v3064_v45  ;;  %v2820_v45 = vld [vmem:[%s3980_s16 + $0xb0] sm:$0xf] }
 0x162   : > { %v1007_v57 = vpop.f32.mrf.mxu0 }
 0x163   : > { %v1008_v58 = vadd.f32 %v3386_v22, %v1007_v57 }
 0x165   : > { %v1054_v29 = vmax.f32 %v1008_v58, 0.0  ;;  %1324 = vmatpush.bf16.msra.mxu1 %v3063_v46  ;;  %v3074_v58 = vld [vmem:[%s3977_s13 + $0x38] sm:$0xff] }
 0x166   : > { %v3106_v46 = vld [vmem:[%s3980_s16 + $0xb8] sm:$0xf0] }
 0x169   : > { %1325 = vmatpush.bf16.msra.mxu1 %v3062_v47 }
 0x16a   : > { %v1009_v59 = vpop.f32.mrf.mxu0 }
 0x16b   : > { %v1010_v39 = vadd.f32 %v3386_v22, %v1009_v59  ;;  %v3050_v22 = vld [vmem:[%s4005_s8 + $0x38] sm:$0xff]  ;;  %s4009_s8 = sld [smem:[#allocation4_spill]] }
 0x16c   : > { %1208 = vmatpush.bf16.msra.mxu3 %v3050_v22 }
 0x16d   : > { %v1055_v61 = vmax.f32 %v1010_v39, 0.0  ;;  %1326 = vmatpush.bf16.msra.mxu1 %v3061_v48  ;;  %v3073_v39 = vld [vmem:[%s3977_s13 + $0x30] sm:$0xff]  ;;  %v2821_v48 = vor.u32 %v3106_v46, %v2820_v45  ;;  %v2740_v45 = vld [vmem:[%s3980_s16 + $0x18] sm:$0xf]  ;;  %v3087_v46 = vld [vmem:[%s3980_s16 + $0x20] sm:$0xf0] }
 0x16f   : > { %v1075_v0 = vpack.c.bf16 %v1055_v61, %v1054_v29 }
 0x170   : > { %1209 = vmatpush.bf16.msra.mxu3 %v3049_v15 }
 0x171   : > { %1097 = vmatpush.bf16.msrb.mxu2 %v1075_v0  ;;  %1327 = vmatpush.bf16.msra.mxu1 %v3060_v50  ;;  %s740_s10 = scalar_lea.vmem %s4009_s8, %s3515_s1  ;;  %v2800_v50 = vld [vmem:[%s3980_s16 + $0x90] sm:$0xf]  ;;  %s1814_s8 = scalar_lea.vmem %s4010_s6, %s3336_s30 }
 0x172   : > { %v1564_v57 = vld [vmem:[%s740_s10] sm:$0xff] }
 0x173   : > { %vm1565_vm1 = vcmp.gt.f32.partialorder %v1564_v57, 0.5  ;;  %v3103_v57 = vld [vmem:[%s3980_s16 + $0xa0] sm:$0xf0] }
 0x174   : > { %1210 = vmatpush.bf16.msra.mxu3 %v3048_v16  ;;  %v1566_v61 = vsel %vm1565_vm1, 1, %v3207_v56 }
 0x175   : > { %1098 = vmatpush.bf16.msrb.mxu2 %v1074_v5  ;;  %1328 = vmatpush.bf16.msra.mxu1 %v3059_v51  ;;  %v3102_v51 = vld [vmem:[%s3980_s16 + $0x98] sm:$0xf0] }
 0x178   : > { %1211 = vmatpush.bf16.msra.mxu3 %v3047_v17  ;;  %v3079_v17 = vld [vmem:[%s3979_s15 + $0x20] sm:$0xff] }
 0x179   : > { %1099 = vmatpush.bf16.msrb.mxu2 %v1073_v9 }
 0x17c   : > { %1212 = vmatpush.bf16.msra.mxu3 %v3046_v18  ;;  %v3078_v18 = vld [vmem:[%s3979_s15 + $0x18] sm:$0xff] }
 0x17d   : > { %1100 = vmatpush.bf16.msrb.mxu2 %v1072_v11 }
 0x180   : > { %1101 = vmatmul.bf16.vlgmr.msrb.gmra.mxu2 %v3206_v55  ;;  %1213 = vmatpush.bf16.msra.mxu3 %v3045_v19  ;;  %v1477_v55 = vld [vmem:[%s736_s5] sm:$0xff]  ;;  %v3077_v19 = vld [vmem:[%s3979_s15 + $0x10] sm:$0xff] }
 0x181   : > { %1481 = vperm.xlu0 %3175, %v1477_v55   ;;  %v2808_v55 = vld [vmem:[%s3980_s16 + $0x98] sm:$0xf] }
 0x184   : > { %1214 = vmatpush.bf16.msra.mxu3 %v3044_v20  ;;  %v3068_v20 = vld [vmem:[%s3977_s13 + $0x8] sm:$0xff] }
 0x188   : > { %1215 = vmatpush.bf16.msra.mxu3 %v3043_v25  ;;  %v1478_v25 = vlaneseq }
 0x189   : > { %1568 = vperm.xlu0 %3175, %v1566_v61  }
 0x18c   : > { %1382 = vmatpush.bf16.msrb.mxu3 %v3058_v26  ;;  %v3579_v26 = vand.u32 127, %v1478_v25 }
 0x190   : > { %1383 = vmatpush.bf16.msrb.mxu3 %v3057_v27 }
 0x194   : > { %1384 = vmatpush.bf16.msrb.mxu3 %v3056_v30 }
 0x198   : > { %1385 = vmatpush.bf16.msrb.mxu3 %v3055_v31  ;;  %v1395_v31 = vld [vmem:[%s3976_s12] sm:$0x1] }
 0x19c   : > { %1386 = vmatpush.bf16.msrb.mxu3 %v3054_v32 }
 0x1a0   : > { %1387 = vmatpush.bf16.msrb.mxu3 %v3053_v33 }
 0x1a4   : > { %1388 = vmatpush.bf16.msrb.mxu3 %v3052_v34 }
 0x1a8   : > { %1389 = vmatpush.bf16.msrb.mxu3 %v3051_v35 }
 0x1cd   : > { %v1089_v12 = vpop.f32.mrf.mxu1 }
 0x1d5   : > { %v1091_v14 = vpop.f32.mrf.mxu1 }
 0x1f3   : > { %v1482_v27 = vpop.permute.xlu0 %1481 }
 0x1f4   : > { %vm1483_vm6 = vcmp.eq.s32.totalorder %v1482_v27, %v3579_v26  ;;  %v2766_v27 = vld [vmem:[%s3980_s16 + $0x54] sm:$0xf0] }
 0x1f5   : > { %vm2724_vm7 = vmpackc.low %vm1483_vm6, %vm1483_vm6 }
 0x203   : > { %v1102_v21 = vpop.f32.mrf.mxu2 }
 0x204   : > { %v1103_v24 = vadd.f32 %v1102_v21, %v1089_v12  ;;  %v3076_v21 = vld [vmem:[%s3979_s15 + $0x8] sm:$0xff] }
 0x206   : > { %v1110_v23 = vpack.c.bf16 %v1103_v24, %v1103_v24  ;;  %v3067_v24 = vld [vmem:[%s3977_s13] sm:$0xff] }
 0x208   : > { %2561 = vmatmul.msk.bf16.vlgmr.msrb.gmra.mxu1 %vm1124_vm0, %v1110_v23  ;;  %v3075_v23 = vld [vmem:[%s3979_s15] sm:$0xff] }
 0x209   : > { %1551 = vmatpush.bf16.msrb.mxu1 %v3082_v49  ;;  %v1415_v49 = vld [vmem:[%s3978_s14] sm:$0x1] }
 0x20b   : > { %v1104_v28 = vpop.f32.mrf.mxu2 }
 0x20c   : > { %v3208_v28 = vmov 1.0|1.0  }
 0x20d   : > { %1552 = vmatpush.bf16.msrb.mxu1 %v3081_v60  ;;  %v1569_v60 = vpop.permute.xlu0 %1568 }
 0x20e   : > { %vm1570_vm8 = vcmp.eq.s32.totalorder %v1569_v60, 1  ;;  %v2736_v60 = vld [vmem:[%s3980_s16 + $0x8] sm:$0xf] }
 0x211   : > { %1553 = vmatpush.bf16.msrb.mxu1 %v3080_v63 }
 0x215   : > { %1554 = vmatpush.bf16.msrb.mxu1 %v3079_v17 }
 0x219   : > { %1555 = vmatpush.bf16.msrb.mxu1 %v3078_v18 }
 0x21d   : > { %1556 = vmatpush.bf16.msrb.mxu1 %v3077_v19 }
 0x221   : > { %1557 = vmatpush.bf16.msrb.mxu1 %v3076_v21  ;;  %v3093_v21 = vld [vmem:[%s3980_s16 + $0x50] sm:$0xf0] }
 0x225   : > { %1558 = vmatpush.bf16.msrb.mxu1 %v3075_v23 }
 0x285   : > { %v1137_v37 = vpop.f32.mrf.mxu1 }
 0x286   : > { %v1138_v38 = vadd.f32 %v1137_v37, %v1111_v36 }
 0x288   : > { %v1141_v40 = vmax.f32 %v1138_v38, 0.0 }
 0x28a   : > { %v1158_v41 = vpack.c.bf16 %v1141_v40, %v1141_v40  ;;  %v2812_v40 = vld [vmem:[%s3980_s16 + $0xa8] sm:$0xf] }
 0x28c   : > { %1216 = vmatmul.bf16.vlgmr.msra.gmra.mxu3 %v1158_v41 }
 0x28d   : > { %v1139_v42 = vpop.f32.mrf.mxu1  ;;  %1464 = vmatpush.bf16.msra.mxu3 %v3074_v58 }
 0x28e   : > { %v3104_v42 = vld [vmem:[%s3980_s16 + $0xac] sm:$0xf] }
 0x28f   : > { %v2817_v47 = vor.u32 %v3104_v42, %v2814_v44 }
 0x291   : > { %1465 = vmatpush.bf16.msra.mxu3 %v3073_v39 }
 0x295   : > { %1466 = vmatpush.bf16.msra.mxu3 %v3072_v62 }
 0x299   : > { %1467 = vmatpush.bf16.msra.mxu3 %v3071_v2  ;;  %v3099_v2 = vld [vmem:[%s3980_s16 + $0x80] sm:$0xf0] }
 0x29c   : > { %1390 = vmatmul.bf16.vlgmr.msrb.gmra.mxu3 %v1158_v41  ;;  %v3105_v41 = vld [vmem:[%s3980_s16 + $0xb0] sm:$0xf0] }
 0x29d   : > { %1468 = vmatpush.bf16.msra.mxu3 %v3070_v4  ;;  %v2813_v43 = vor.u32 %v3105_v41, %v2812_v40  ;;  %v2760_v40 = vld [vmem:[%s3980_s16 + $0x38] sm:$0xf]  ;;  %v3091_v41 = vld [vmem:[%s3980_s16 + $0x40] sm:$0xf0] }
 0x29f   : > { %1757 = vmatpush.bf16.msra.mxu2 %v2813_v43  ;;  %v2761_v43 = vor.u32 %v3091_v41, %v2760_v40  ;;  %v3113_v40 = vld [vmem:[%s3981_s17 + $0x30] sm:$0xff]  ;;  %v3112_v41 = vld [vmem:[%s3981_s17 + $0x28] sm:$0xff] }
 0x2a1   : > { %1469 = vmatpush.bf16.msra.mxu3 %v3069_v6  ;;  %v2796_v6 = vld [vmem:[%s3980_s16 + $0x80] sm:$0xf] }
 0x2a5   : > { %1470 = vmatpush.bf16.msra.mxu3 %v3068_v20  ;;  %v2764_v20 = vld [vmem:[%s3980_s16 + $0x48] sm:$0xf] }
 0x2a6   : > { %v2765_v23 = vor.u32 %v3093_v21, %v2764_v20 }
 0x2a9   : > { %1471 = vmatpush.bf16.msra.mxu3 %v3067_v24  ;;  %v3092_v24 = vld [vmem:[%s3980_s16 + $0x4c] sm:$0xf] }
 0x2ad   : > { %1770 = vmatpush.bf16.msrb.mxu3 %v2817_v47  ;;  %v3086_v47 = vld [vmem:[%s3980_s16 + $0x1c] sm:$0xf] }
 0x30f   : > { %v1217_v53 = vpop.f32.mrf.mxu3 }
 0x310   : > { %v1218_v54 = vadd.f32 %v1217_v53, %v1159_v52  ;;  %v3101_v52 = vld [vmem:[%s3980_s16 + $0x94] sm:$0xf]  ;;  %v2801_v53 = vor.u32 %v3102_v51, %v2800_v50  ;;  %v2742_v50 = vld [vmem:[%s3980_s16 + $0x24] sm:$0xf0]  ;;  %v2748_v51 = vld [vmem:[%s3980_s16 + $0x20] sm:$0xf] }
 0x312   : > { %v2594_v59 = vmul.f32 -1.442695, %v1218_v54  ;;  %v2802_v54 = vld [vmem:[%s3980_s16 + $0x9c] sm:$0xf0]  ;;  %1758 = vmatpush.bf16.msra.mxu2 %v2801_v53  ;;  %v2745_v53 = vor.u32 %v3086_v47, %v2742_v50  ;;  %v3109_v47 = vld [vmem:[%s3981_s17 + $0x10] sm:$0xff] }
 0x313   : > { %v2805_v58 = vor.u32 %v3101_v52, %v2802_v54  ;;  %v3088_v52 = vld [vmem:[%s3980_s16 + $0x28] sm:$0xf0] }
 0x314   : > { %3178 = vpow2.f32 %v2594_v59  ;;  %v2809_v59 = vor.u32 %v3103_v57, %v2808_v55  ;;  %v2749_v54 = vor.u32 %v3088_v52, %v2748_v51  ;;  %v2728_v55 = vld [vmem:[%s3980_s16] sm:$0xf]  ;;  %v3084_v57 = vld [vmem:[%s3980_s16 + $0x8] sm:$0xf0] }
 0x315   : > { %1771 = vmatpush.bf16.msrb.mxu3 %v2805_v58  ;;  %v3083_v58 = vld [vmem:[%s3980_s16 + $0x4] sm:$0xf] }
 0x317   : > { %v1219_v29 = vpop.f32.mrf.mxu3 }
 0x31a   : > { %v3179_v0 = vpop.eup %3178 }
 0x31b   : > { %v1224_v1 = vadd.f32 1.0, %v3179_v0 }
 0x31d   : > { %3180 = vrcp.f32 %v1224_v1  ;;  %v1236_v10 = vand.u32 2147483648, %v1224_v1  ;;  %v1234_v12 = vand.u32 2147483647, %v1224_v1  ;;  %vm1230_vm3 = vweird.f32 %v1224_v1 }
 0x31f   : > { %v1391_v3 = vpop.f32.mrf.mxu3  ;;  %v1237_v14 = vor.u32 1.1754944e-38, %v1236_v10  ;;  %vm1235_vm5 = vcmp.eq.f32.partialorder %v1234_v12, 8.507059e+37  ;;  %v3096_v12 = vld [vmem:[%s3980_s16 + $0x68] sm:$0xf0] }
 0x323   : > { %v3181_v5 = vpop.eup %3180 }
 0x324   : > { %v1226_v7 = vmul.f32 %v3181_v5, %v1224_v1  ;;  %vm1231_vm2 = vweird.f32 %v3181_v5  ;;  %v2788_v1 = vld [vmem:[%s3980_s16 + $0x78] sm:$0xf] }
 0x325   : > { %vm1232_vm4 = vmor %vm1230_vm3, %vm1231_vm2  ;;  %v2789_v4 = vor.u32 %v3099_v2, %v2788_v1  ;;  %vm1823_vm2 = vcmask 64512  }
 0x326   : > { %v1227_v8 = vsub.f32 1.0, %v1226_v7  ;;  %v3100_v7 = vld [vmem:[%s3980_s16 + $0x88] sm:$0xf0] }
 0x327   : > { %v1393_v9 = vpop.f32.mrf.mxu3  ;;  %v2797_v10 = vor.u32 %v3100_v7, %v2796_v6  ;;  %1759 = vmatpush.bf16.msra.mxu2 %v2789_v4 }
 0x328   : > { %v1228_v11 = vmul.f32 %v3181_v5, %v1227_v8  ;;  %v3209_v8 = vmov 128.0  }
 0x329   : > { %3182 = vrcp.f32 %v3209_v8 }
 0x32a   : > { %v1229_v13 = vadd.f32 %v3181_v5, %v1228_v11  ;;  %v2776_v11 = vld [vmem:[%s3980_s16 + $0x60] sm:$0xf] }
 0x32c   : > { %v1233_v22 = vsel %vm1232_vm4, %v3181_v5, %v1229_v13  ;;  %v2790_v5 = vld [vmem:[%s3980_s16 + $0x84] sm:$0xf0]  ;;  %v3095_v13 = vld [vmem:[%s3980_s16 + $0x64] sm:$0xf] }
 0x32d   : > { %v1238_v15 = vsel %vm1235_vm5, %v1237_v14, %v1233_v22  ;;  %v2777_v14 = vor.u32 %v3096_v12, %v2776_v11  ;;  %v2778_v22 = vld [vmem:[%s3980_s16 + $0x6c] sm:$0xf0] }
 0x32e   : > { %v1272_v16 = vpack.c.bf16 %v1238_v15, %v1238_v15  ;;  %v2784_v15 = vld [vmem:[%s3980_s16 + $0x68] sm:$0xf]  ;;  %v2781_v17 = vor.u32 %v3095_v13, %v2778_v22 }
 0x32f   : > { %1760 = vmatpush.bf16.msra.mxu2 %v2777_v14  ;;  %v3183_v19 = vpop.eup %3182 }
 0x330   : > { %1329 = vmatmul.bf16.vlgmr.msra.gmra.mxu1 %v1272_v16  ;;  %v3097_v16 = vld [vmem:[%s3980_s16 + $0x70] sm:$0xf0]  ;;  %vm1581_vm9 = vweird.f32 %v3183_v19 }
 0x331   : > { %1783 = vmatpush.bf16.msra.mxu1 %v2821_v48  ;;  %v2785_v18 = vor.u32 %v3097_v16, %v2784_v15  ;;  %v2741_v48 = vor.u32 %v3087_v46, %v2740_v45 }
 0x333   : > { %1761 = vmatpush.bf16.msra.mxu2 %v2765_v23  ;;  %v1815_v23 = vld [vmem:[%s1814_s8] sm:$0x1] }
 0x334   : > { %vm1817_vm14 = vcmp.gt.f32.partialorder %v1815_v23, 0.5 }
 0x335   : > { %1784 = vmatpush.bf16.msra.mxu1 %v2809_v59 }
 0x339   : > { %1785 = vmatpush.bf16.msra.mxu1 %v2797_v10 }
 0x33d   : > { %1786 = vmatpush.bf16.msra.mxu1 %v2785_v18 }
 0x340   : > { %2725 = vmatmul.msk.bf16.vlgmr.msrb.gmra.mxu1 %vm2724_vm7, %v3208_v28  ;;  %v2772_v28 = vld [vmem:[%s3980_s16 + $0x50] sm:$0xf] }
 0x3ad   : > { %v1330_v30 = vpop.f32.mrf.mxu1 }
 0x3ae   : > { %v1392_v32 = vadd.f32 %v1391_v3, %v1330_v30  ;;  %v3098_v3 = vld [vmem:[%s3980_s16 + $0x7c] sm:$0xf] }
 0x3af   : > { %v2793_v9 = vor.u32 %v3098_v3, %v2790_v5  ;;  %v3094_v30 = vld [vmem:[%s3980_s16 + $0x58] sm:$0xf0] }
 0x3b0   : > { %v1396_v33 = vadd.f32 %v1395_v31, %v1392_v32  ;;  %v2769_v31 = vor.u32 %v3092_v24, %v2766_v27  ;;  %v2773_v32 = vor.u32 %v3094_v30, %v2772_v28  ;;  %v1818_v27 = vsel %vm1817_vm14, 1, %v3207_v56 }
 0x3b1   : > { %1772 = vmatpush.bf16.msrb.mxu3 %v2793_v9  ;;  %v1813_v28 = vshrl.u32 %v1478_v25, 7  ;;  %v1819_v30 = vperm.slane %v1818_v27, 0  ;;  %v2891_v27 = vld [vmem:[%s3982_s18 + $0x48] sm:$0xf0] }
 0x3b2   : > { %v1397_v34 = vmax.f32 %v1396_v33, 0.0  ;;  %v1577_v33 = vmul.f32 128.0, %v3183_v19  ;;  %1787 = vmatpush.bf16.msra.mxu1 %v2773_v32 }
 0x3b3   : > { %vm1816_vm15 = vcmp.le.s32.totalorder %v3579_v26, %v1813_v28  ;;  %vm1820_vm0 = vcmp.eq.s32.totalorder %v1819_v30, 1  ;;  %v3114_v26 = vld [vmem:[%s3981_s17 + $0x38] sm:$0xff]  ;;  %v2881_v30 = vld [vmem:[%s3982_s18 + $0x30] sm:$0xf] }
 0x3b4   : > { %v1414_v35 = vpack.c.bf16 %v1397_v34, %v1397_v34  ;;  %v2752_v34 = vld [vmem:[%s3980_s16 + $0x30] sm:$0xf]  ;;  %v1578_v44 = vsub.f32 1.0, %v1577_v33  ;;  %vm1821_vm1 = vmand %vm1816_vm15, %vm1820_vm0 }
 0x3b5   : > { %v1332_v36 = vpop.f32.mrf.mxu1  ;;  %1773 = vmatpush.bf16.msrb.mxu3 %v2781_v17 }
 0x3b6   : > { %1472 = vmatmul.bf16.vlgmr.msra.gmra.mxu3 %v1414_v35  ;;  %v3090_v35 = vld [vmem:[%s3980_s16 + $0x38] sm:$0xf0]  ;;  %v3089_v36 = vld [vmem:[%s3980_s16 + $0x34] sm:$0xf]  ;;  %1788 = vmatpush.bf16.msra.mxu1 %v2761_v43  ;;  %v1579_v59 = vmul.f32 %v3183_v19, %v1578_v44  ;;  %v3111_v43 = vld [vmem:[%s3981_s17 + $0x20] sm:$0xff] }
 0x3b7   : > { %v3110_v44 = vld [vmem:[%s3981_s17 + $0x18] sm:$0xff] }
 0x3b9   : > { %1774 = vmatpush.bf16.msrb.mxu3 %v2769_v31 }
 0x3ba   : > { %1789 = vmatpush.bf16.msra.mxu1 %v2749_v54 }
 0x3bd   : > { %v1560_v37 = vpop.f32.mrf.mxu1 }
 0x3c5   : > { %v1562_v38 = vpop.f32.mrf.mxu1 }
 0x3c6   : > { %v2754_v38 = vld [vmem:[%s3980_s16 + $0x3c] sm:$0xf0] }
 0x3c7   : > { %v2757_v42 = vor.u32 %v3089_v36, %v2754_v38 }
 0x3c9   : > { %1775 = vmatpush.bf16.msrb.mxu3 %v2757_v42 }
 0x3cd   : > { %1776 = vmatpush.bf16.msrb.mxu3 %v2745_v53  ;;  %v3108_v53 = vld [vmem:[%s3981_s17 + $0x8] sm:$0xff] }
 0x439   : > { %v1473_v39 = vpop.f32.mrf.mxu3 }
 0x43a   : > { %v1474_v29 = vadd.f32 %v1473_v39, %v1415_v49  ;;  %v2729_v49 = vor.u32 %v3084_v57, %v2728_v55  ;;  %v2730_v39 = vld [vmem:[%s3980_s16 + $0xc] sm:$0xf0] }
 0x43c   : > { %v1571_v61 = vperm.slane %v1474_v29, 0  ;;  %v3085_v29 = vld [vmem:[%s3980_s16 + $0x10] sm:$0xf0] }
 0x43e   : > { %v3624_v62 = vsel %vm1570_vm8, %v1571_v61, %v1560_v37  ;;  %v2753_v37 = vor.u32 %v3090_v35, %v2752_v34  ;;  %v2733_v61 = vor.u32 %v3083_v58, %v2730_v39  ;;  %v3107_v39 = vld [vmem:[%s3981_s17] sm:$0xff] }
 0x43f   : > { %v1573_v63 = vmul.f32 %v3624_v62, %v3624_v62 }
 0x440   : > { %1762 = vmatpush.bf16.msra.mxu2 %v2753_v37  ;;  %1777 = vmatpush.bf16.msrb.mxu3 %v2733_v61 }
 0x441   : > { %v1475_v0 = vpop.f32.mrf.mxu3  ;;  %1574 = vadd.xlane.f32.xlu1 %v1573_v63  ;;  %v2737_v63 = vor.u32 %v3085_v29, %v2736_v60 }
 0x442   : > { %v1580_v0 = vadd.f32 %v3183_v19, %v1579_v59 }
 0x443   : > { %1790 = vmatpush.bf16.msra.mxu1 %v2737_v63  ;;  %v2913_v63 = vld [vmem:[%s3982_s18 + $0x70] sm:$0xf] }
 0x444   : > { %1763 = vmatpush.bf16.msra.mxu2 %v2741_v48  ;;  %v3736_v1 = vsel %vm1581_vm9, %v3183_v19, %v1580_v0  ;;  %v3130_v0 = vld [vmem:[%s3982_s18 + $0x74] sm:$0xf0] }
 0x448   : > { %1764 = vmatpush.bf16.msra.mxu2 %v2729_v49 }
 0x4b4   : > { %v1575_v2 = vpop.xlane.xlu1 %1574 }
 0x4b5   : > { %v1583_v3 = vmul.f32 %v3736_v1, %v1575_v2  ;;  %v3129_v2 = vld [vmem:[%s3982_s18 + $0x74] sm:$0xf] }
 0x4b7   : > { %v1584_v4 = vadd.f32 1e-06, %v1583_v3  ;;  %v2914_v3 = vor.u32 %v3130_v0, %v2913_v63 }
 0x4b9   : > { %3184 = vrsqrt.f32 %v1584_v4  ;;  %vm1591_vm11 = vweird.f32 %v1584_v4 }
 0x4bf   : > { %v3185_v5 = vpop.eup %3184 }
 0x4c0   : > { %v1586_v6 = vmul.f32 %v3185_v5, %v1584_v4  ;;  %vm1592_vm10 = vweird.f32 %v3185_v5  ;;  %v2915_v4 = vld [vmem:[%s3982_s18 + $0x78] sm:$0xf0] }
 0x4c1   : > { %vm1593_vm12 = vmor %vm1591_vm11, %vm1592_vm10 }
 0x4c2   : > { %v1587_v7 = vmul.f32 %v3185_v5, %v1586_v6  ;;  %v3128_v6 = vld [vmem:[%s3982_s18 + $0x64] sm:$0xf0] }
 0x4c4   : > { %v1588_v8 = vmul.f32 0.5, %v1587_v7  ;;  %v2918_v7 = vor.u32 %v3129_v2, %v2915_v4  ;;  %v3145_v2 = vld [vmem:[%s3984_s20 + $0x70] sm:$0xff]  ;;  %v3144_v4 = vld [vmem:[%s3984_s20 + $0x68] sm:$0xff] }
 0x4c6   : > { %v1589_v9 = vsub.f32 1.5, %v1588_v8  ;;  %v3127_v8 = vld [vmem:[%s3982_s18 + $0x64] sm:$0xf]  ;;  %2081 = vmatpush.bf16.msrb.mxu1 %v2918_v7  ;;  %v3136_v7 = vld [vmem:[%s3984_s20 + $0x28] sm:$0xff] }
 0x4c8   : > { %v1590_v10 = vmul.f32 %v3185_v5, %v1589_v9  ;;  %v2907_v9 = vld [vmem:[%s3982_s18 + $0x68] sm:$0xf0] }
 0x4ca   : > { %v1594_v11 = vsel %vm1593_vm12, %v3185_v5, %v1590_v10  ;;  %v2905_v5 = vld [vmem:[%s3982_s18 + $0x60] sm:$0xf] }
 0x4cb   : > { %v1595_v12 = vmul.f32 %v1594_v11, %v3624_v62  ;;  %v2906_v10 = vor.u32 %v3128_v6, %v2905_v5  ;;  %v2910_v11 = vor.u32 %v3127_v8, %v2907_v9  ;;  %v3137_v5 = vld [vmem:[%s3984_s20 + $0x30] sm:$0xff]  ;;  %v3143_v6 = vld [vmem:[%s3984_s20 + $0x60] sm:$0xff]  ;;  %v3142_v8 = vld [vmem:[%s3984_s20 + $0x58] sm:$0xff] }
 0x4cc   : > { %v3135_v9 = vld [vmem:[%s3984_s20 + $0x20] sm:$0xff] }
 0x4cd   : > { %v1596_v13 = vpack.c.bf16 %v1595_v12, %v1595_v12  ;;  %2082 = vmatpush.bf16.msrb.mxu1 %v2910_v11  ;;  %v3134_v11 = vld [vmem:[%s3984_s20 + $0x18] sm:$0xff] }
 0x4cf   : > { %1765 = vmatmul.bf16.vlgmr.msra.gmra.mxu2 %v1596_v13  ;;  %1778 = vmatmul.bf16.vlgmr.msrb.gmra.mxu3 %v1596_v13 }
 0x4d0   : > { %1791 = vmatmul.bf16.vlgmr.msra.gmra.mxu1 %v1596_v13 }
 0x54d   : > { %v1792_v14 = vpop.f32.mrf.mxu1 }
 0x54e   : > { %v1849_v22 = vpack.c.bf16 %v1792_v14, %v1792_v14 }
 0x550   : > { %v1855_v15 = vsel %vm1853_vm13, %v1849_v22, 0 }
 0x551   : > { %1864 = vmatpush.bf16.msra.mxu3 %v1855_v15  ;;  %v2897_v15 = vld [vmem:[%s3982_s18 + $0x50] sm:$0xf] }
 0x552   : > { %v1766_v16 = vpop.f32.mrf.mxu2  ;;  %v1779_v17 = vpop.f32.mrf.mxu3 }
 0x553   : > { %v1797_v18 = vpack.c.bf16 %v1779_v17, %v1779_v17  ;;  %v1796_v20 = vpack.c.bf16 %v1766_v16, %v1766_v16  ;;  %v3126_v16 = vld [vmem:[%s3982_s18 + $0x54] sm:$0xf0]  ;;  %v3125_v17 = vld [vmem:[%s3982_s18 + $0x54] sm:$0xf] }
 0x555   : > { %v1794_v19 = vpop.f32.mrf.mxu1  ;;  %1805 = vmatpush.bf16.xpose.msrb.mxu2 %v1797_v18  ;;  %2068 = vmatpush.bf16.msrb.mxu3 %v2914_v3  ;;  %v2898_v18 = vor.u32 %v3126_v16, %v2897_v15  ;;  %v3138_v3 = vld [vmem:[%s3984_s20 + $0x38] sm:$0xff]  ;;  %v3132_v15 = vld [vmem:[%s3984_s20 + $0x8] sm:$0xff]  ;;  %v1982_v16 = vld [vmem:[%s3983_s19] sm:$0x3] }
 0x559   : > { %2069 = vmatpush.bf16.msrb.mxu3 %v2906_v10  ;;  %v3141_v10 = vld [vmem:[%s3984_s20 + $0x50] sm:$0xff] }
 0x55a   : > { %v1768_v21 = vpop.f32.mrf.mxu2  ;;  %v1781_v24 = vpop.f32.mrf.mxu3 }
 0x55b   : > { %v3124_v21 = vld [vmem:[%s3982_s18 + $0x44] sm:$0xf0]  ;;  %v3123_v24 = vld [vmem:[%s3982_s18 + $0x44] sm:$0xf] }
 0x55c   : > { %1806 = vmatmul.bf16.vlgmr.msrb.gmra.mxu2 %v1796_v20  ;;  %v2889_v20 = vld [vmem:[%s3982_s18 + $0x40] sm:$0xf]  ;;  %v2894_v28 = vor.u32 %v3123_v24, %v2891_v27 }
 0x55d   : > { %1935 = vmatpush.bf16.msra.mxu2 %v3114_v26  ;;  %2070 = vmatpush.bf16.msrb.mxu3 %v2898_v18  ;;  %v2890_v23 = vor.u32 %v3124_v21, %v2889_v20  ;;  %v1985_v18 = vperm.slane %v1982_v16, 1  ;;  %v1984_v21 = vperm.slane %v1982_v16, 0 }
 0x561   : > { %1936 = vmatpush.bf16.msra.mxu2 %v3113_v40  ;;  %2071 = vmatpush.bf16.msrb.mxu3 %v2890_v23  ;;  %v2865_v40 = vld [vmem:[%s3982_s18 + $0x10] sm:$0xf] }
 0x565   : > { %1937 = vmatpush.bf16.msra.mxu2 %v3112_v41  ;;  %v3118_v41 = vld [vmem:[%s3982_s18 + $0x14] sm:$0xf0] }
 0x569   : > { %1938 = vmatpush.bf16.msra.mxu2 %v3111_v43  ;;  %v2866_v43 = vor.u32 %v3118_v41, %v2865_v40 }
 0x56d   : > { %1939 = vmatpush.bf16.msra.mxu2 %v3110_v44  ;;  %v2867_v44 = vld [vmem:[%s3982_s18 + $0x18] sm:$0xf0] }
 0x571   : > { %1940 = vmatpush.bf16.msra.mxu2 %v3109_v47  ;;  %v3116_v47 = vld [vmem:[%s3982_s18 + $0x4] sm:$0xf0] }
 0x575   : > { %1941 = vmatpush.bf16.msra.mxu2 %v3108_v53  ;;  %v3146_v53 = vld [vmem:[%s3984_s20 + $0x78] sm:$0xff] }
 0x579   : > { %1942 = vmatpush.bf16.msra.mxu2 %v3107_v39 }
 0x57d   : > { %2242 = vmatpush.bf16.msrb.mxu2 %v3138_v3 }
 0x581   : > { %2243 = vmatpush.bf16.msrb.mxu2 %v3137_v5 }
 0x585   : > { %2244 = vmatpush.bf16.msrb.mxu2 %v3136_v7 }
 0x589   : > { %2245 = vmatpush.bf16.msrb.mxu2 %v3135_v9 }
 0x58d   : > { %2246 = vmatpush.bf16.msrb.mxu2 %v3134_v11 }
 0x5df   : > { %v1807_v31 = vpop.f32.mrf.mxu2 }
 0x5e0   : > { %v1811_v32 = vmul.f32 0.088388346, %v1807_v31  ;;  %v3122_v31 = vld [vmem:[%s3982_s18 + $0x34] sm:$0xf0] }
 0x5e2   : > { %v1822_v33 = vsel %vm1821_vm1, %v1811_v32, -1e+09  ;;  %v3121_v32 = vld [vmem:[%s3982_s18 + $0x34] sm:$0xf] }
 0x5e3   : > { %v1824_v34 = vsel %vm1823_vm2, %v1822_v33, -inf }
 0x5e4   : > { %1825 = vmax.xlane.f32.xlu1 %v1824_v34  ;;  %v2883_v34 = vld [vmem:[%s3982_s18 + $0x38] sm:$0xf0] }
 0x5e7   : > { %v1809_v35 = vpop.f32.mrf.mxu2 }
 0x5e8   : > { %v2886_v35 = vor.u32 %v3121_v32, %v2883_v34 }
 0x657   : > { %v1826_v36 = vpop.xlane.xlu1 %1825 }
 0x658   : > { %v1827_v37 = vsub.f32 %v1822_v33, %v1826_v36  ;;  %v2882_v33 = vor.u32 %v3122_v31, %v2881_v30  ;;  %v2873_v36 = vld [vmem:[%s3982_s18 + $0x20] sm:$0xf] }
 0x65a   : > { %v1828_v38 = vmul.f32 1.442695, %v1827_v37  ;;  %2072 = vmatpush.bf16.msrb.mxu3 %v2882_v33  ;;  %v3120_v37 = vld [vmem:[%s3982_s18 + $0x24] sm:$0xf0] }
 0x65c   : > { %3186 = vpow2.f32 %v1828_v38  ;;  %v3119_v38 = vld [vmem:[%s3982_s18 + $0x24] sm:$0xf] }
 0x662   : > { %v3187_v56 = vpop.eup %3186 }
 0x663   : > { %v1830_v25 = vsel %vm1823_vm2, %v3187_v56, 0.0 }
 0x664   : > { %1831 = vadd.xlane.f32.xlu2 %v1830_v25  ;;  %v2875_v25 = vld [vmem:[%s3982_s18 + $0x28] sm:$0xf0] }
 0x665   : > { %v2878_v26 = vor.u32 %v3119_v38, %v2875_v25 }
 0x6d7   : > { %v1832_v42 = vpop.xlane.xlu2 %1831 }
 0x6d8   : > { %3188 = vrcp.f32 %v1832_v42  ;;  %v1844_v50 = vand.u32 2147483648, %v1832_v42  ;;  %v1842_v52 = vand.u32 2147483647, %v1832_v42  ;;  %vm1838_vm4 = vweird.f32 %v1832_v42 }
 0x6da   : > { %v1845_v55 = vor.u32 1.1754944e-38, %v1844_v50  ;;  %vm1843_vm6 = vcmp.eq.f32.partialorder %v1842_v52, 8.507059e+37 }
 0x6de   : > { %v3189_v45 = vpop.eup %3188 }
 0x6df   : > { %v1834_v46 = vmul.f32 %v3189_v45, %v1832_v42  ;;  %vm1839_vm3 = vweird.f32 %v3189_v45  ;;  %v3117_v42 = vld [vmem:[%s3982_s18 + $0x14] sm:$0xf] }
 0x6e0   : > { %vm1840_vm5 = vmor %vm1838_vm4, %vm1839_vm3 }
 0x6e1   : > { %v1835_v48 = vsub.f32 1.0, %v1834_v46  ;;  %v2857_v46 = vld [vmem:[%s3982_s18] sm:$0xf] }
 0x6e2   : > { %v2858_v50 = vor.u32 %v3116_v47, %v2857_v46  ;;  %v3154_v47 = vld [vmem:[%s3986_s22 + $0x38] sm:$0xff] }
 0x6e3   : > { %v1836_v51 = vmul.f32 %v3189_v45, %v1835_v48  ;;  %v3115_v48 = vld [vmem:[%s3982_s18 + $0x4] sm:$0xf] }
 0x6e5   : > { %v1837_v54 = vadd.f32 %v3189_v45, %v1836_v51  ;;  %v2859_v51 = vld [vmem:[%s3982_s18 + $0x8] sm:$0xf0] }
 0x6e6   : > { %v2862_v52 = vor.u32 %v3115_v48, %v2859_v51  ;;  %v3153_v48 = vld [vmem:[%s3986_s22 + $0x30] sm:$0xff] }
 0x6e7   : > { %v1841_v57 = vsel %vm1840_vm5, %v3189_v45, %v1837_v54  ;;  %v2870_v45 = vor.u32 %v3117_v42, %v2867_v44 }
 0x6e8   : > { %v1846_v58 = vsel %vm1843_vm6, %v1845_v55, %v1841_v57 }
 0x6e9   : > { %v1847_v59 = vmul.f32 %v3187_v56, %v1846_v58  ;;  %v2874_v56 = vor.u32 %v3120_v37, %v2873_v36 }
 0x6eb   : > { %v1848_v49 = vpack.c.bf16 %v1847_v59, %v1847_v59  ;;  %2073 = vmatpush.bf16.msrb.mxu3 %v2874_v56 }
 0x6ed   : > { %2822 = vmatmul.msk.bf16.vlgmr.msra.gmra.mxu3 %vm1823_vm2, %v1848_v49 }
 0x6ef   : > { %2074 = vmatpush.bf16.msrb.mxu3 %v2866_v43 }
 0x6f3   : > { %2075 = vmatpush.bf16.msrb.mxu3 %v2858_v50 }
 0x6f7   : > { %2255 = vmatpush.bf16.msra.mxu3 %v3146_v53  ;;  %v3177_v53 = vld [vmem:[%s3985_s21] ss:$0 sm:$0xff] }
 0x6fb   : > { %2256 = vmatpush.bf16.msra.mxu3 %v3145_v2 }
 0x6ff   : > { %2257 = vmatpush.bf16.msra.mxu3 %v3144_v4 }
 0x703   : > { %2258 = vmatpush.bf16.msra.mxu3 %v3143_v6 }
 0x707   : > { %2259 = vmatpush.bf16.msra.mxu3 %v3142_v8 }
 0x70b   : > { %2260 = vmatpush.bf16.msra.mxu3 %v3141_v10 }
 0x770   : > { %v1866_v60 = vpop.f32.mrf.mxu3 }
 0x771   : > { %v1886_v29 = vpack.c.bf16 %v1866_v60, %v1866_v60 }
 0x773   : > { %1943 = vmatmul.bf16.vlgmr.msra.gmra.mxu2 %v1886_v29 }
 0x778   : > { %v1868_v61 = vpop.f32.mrf.mxu3 }
 0x7f6   : > { %v1944_v12 = vpop.f32.mrf.mxu2 }
 0x7f7   : > { %v3799_v13 = vadd.f32 %v1944_v12, %v3624_v62  ;;  %v2899_v62 = vld [vmem:[%s3982_s18 + $0x58] sm:$0xf0]  ;;  %v3140_v12 = vld [vmem:[%s3984_s20 + $0x48] sm:$0xff] }
 0x7f8   : > { %v2902_v19 = vor.u32 %v3125_v17, %v2899_v62  ;;  %2261 = vmatpush.bf16.msra.mxu3 %v3140_v12  ;;  %v3131_v17 = vld [vmem:[%s3984_s20] sm:$0xff] }
 0x7f9   : > { %v1949_v14 = vmul.f32 %v3799_v13, %v3799_v13 }
 0x7fa   : > { %2083 = vmatpush.bf16.msrb.mxu1 %v2902_v19 }
 0x7fb   : > { %1950 = vadd.xlane.f32.xlu2 %v1949_v14  ;;  %v3133_v14 = vld [vmem:[%s3984_s20 + $0x10] sm:$0xff] }
 0x7fc   : > { %2247 = vmatpush.bf16.msrb.mxu2 %v3133_v14 }
 0x7fe   : > { %v1946_v22 = vpop.f32.mrf.mxu2  ;;  %2084 = vmatpush.bf16.msrb.mxu1 %v2894_v28 }
 0x7ff   : > { %v3139_v22 = vld [vmem:[%s3984_s20 + $0x40] sm:$0xff] }
 0x800   : > { %2262 = vmatpush.bf16.msra.mxu3 %v3139_v22  ;;  %2248 = vmatpush.bf16.msrb.mxu2 %v3132_v15 }
 0x802   : > { %2085 = vmatpush.bf16.msrb.mxu1 %v2886_v35 }
 0x804   : > { %2249 = vmatpush.bf16.msrb.mxu2 %v3131_v17 }
 0x806   : > { %2086 = vmatpush.bf16.msrb.mxu1 %v2878_v26 }
 0x80a   : > { %2087 = vmatpush.bf16.msrb.mxu1 %v2870_v45 }
 0x80e   : > { %2088 = vmatpush.bf16.msrb.mxu1 %v2862_v52 }
 0x812   : > { %2355 = vmatpush.bf16.msra.mxu1 %v3154_v47 }
 0x816   : > { %2356 = vmatpush.bf16.msra.mxu1 %v3153_v48 }
 0x86e   : > { %v1951_v54 = vpop.xlane.xlu2 %1950 }
 0x86f   : > { %v1952_v55 = vmul.f32 %v1951_v54, %v3736_v1 }
 0x871   : > { %v1953_v57 = vadd.f32 1e-06, %v1952_v55 }
 0x873   : > { %3190 = vrsqrt.f32 %v1953_v57  ;;  %vm1960_vm8 = vweird.f32 %v1953_v57 }
 0x879   : > { %v3191_v58 = vpop.eup %3190 }
 0x87a   : > { %v1955_v59 = vmul.f32 %v3191_v58, %v1953_v57  ;;  %vm1961_vm7 = vweird.f32 %v3191_v58 }
 0x87b   : > { %vm1962_vm9 = vmor %vm1960_vm8, %vm1961_vm7 }
 0x87c   : > { %v1956_v49 = vmul.f32 %v3191_v58, %v1955_v59 }
 0x87e   : > { %v1957_v39 = vmul.f32 0.5, %v1956_v49  ;;  %v3152_v49 = vld [vmem:[%s3986_s22 + $0x28] sm:$0xff] }
 0x87f   : > { %2357 = vmatpush.bf16.msra.mxu1 %v3152_v49 }
 0x880   : > { %v1958_v60 = vsub.f32 1.5, %v1957_v39  ;;  %v3151_v39 = vld [vmem:[%s3986_s22 + $0x20] sm:$0xff] }
 0x882   : > { %v1959_v29 = vmul.f32 %v3191_v58, %v1958_v60  ;;  %v3150_v60 = vld [vmem:[%s3986_s22 + $0x18] sm:$0xff] }
 0x883   : > { %2358 = vmatpush.bf16.msra.mxu1 %v3151_v39 }
 0x884   : > { %v1963_v61 = vsel %vm1962_vm9, %v3191_v58, %v1959_v29  ;;  %v3148_v29 = vld [vmem:[%s3986_s22 + $0x8] sm:$0xff] }
 0x885   : > { %v1964_v63 = vmul.f32 %v1963_v61, %v3799_v13  ;;  %v3147_v61 = vld [vmem:[%s3986_s22] sm:$0xff] }
 0x887   : > { %v1981_v0 = vpack.c.bf16 %v1964_v63, %v1964_v63  ;;  %2359 = vmatpush.bf16.msra.mxu1 %v3150_v60 }
 0x889   : > { %2076 = vmatmul.bf16.vlgmr.msrb.gmra.mxu3 %v1981_v0  ;;  %2089 = vmatmul.bf16.vlgmr.msrb.gmra.mxu1 %v1981_v0 }
 0x906   : > { %v2090_v62 = vpop.f32.mrf.mxu1 }
 0x907   : > { %v2091_v19 = vadd.f32 %v2090_v62, %v1985_v18 }
 0x909   : > { %v2095_v20 = vmul.f32 %v2091_v19, %v2091_v19 }
 0x90b   : > { %v2097_v24 = vmul.f32 %v2095_v20, %v2091_v19 }
 0x90c   : > { %v2077_v23 = vpop.f32.mrf.mxu3 }
 0x90d   : > { %v2099_v27 = vmul.f32 0.044715, %v2097_v24  ;;  %v2078_v28 = vadd.f32 %v2077_v23, %v1984_v21 }
 0x90e   : > { %v2092_v30 = vpop.f32.mrf.mxu1 }
 0x90f   : > { %v2101_v31 = vadd.f32 %v2099_v27, %v2091_v19  ;;  %v2094_v32 = vmul.f32 %v2078_v28, %v2078_v28 }
 0x911   : > { %v2103_v33 = vmul.f32 0.7978846, %v2101_v31  ;;  %v2096_v34 = vmul.f32 %v2094_v32, %v2078_v28 }
 0x913   : > { %3192 = vtanh.f32 %v2103_v33  ;;  %v2098_v35 = vmul.f32 0.044715, %v2096_v34 }
 0x914   : > { %v2079_v36 = vpop.f32.mrf.mxu3 }
 0x915   : > { %v2100_v37 = vadd.f32 %v2098_v35, %v2078_v28 }
 0x917   : > { %v2102_v38 = vmul.f32 0.7978846, %v2100_v37 }
 0x919   : > { %v3193_v56 = vpop.eup %3192  ;;  %3194 = vtanh.f32 %v2102_v38 }
 0x91a   : > { %v2107_v25 = vadd.f32 1.0, %v3193_v56 }
 0x91c   : > { %v2109_v26 = vmul.f32 0.5, %v2107_v25 }
 0x91e   : > { %v2111_v40 = vmul.f32 %v2109_v26, %v2091_v19 }
 0x91f   : > { %v3195_v41 = vpop.eup %3194 }
 0x920   : > { %v2145_v42 = vpack.c.bf16 %v2111_v40, %v2111_v40  ;;  %v2106_v43 = vadd.f32 1.0, %v3195_v41 }
 0x922   : > { %2263 = vmatmul.bf16.vlgmr.msra.gmra.mxu3 %v2145_v42  ;;  %v2108_v44 = vmul.f32 0.5, %v2106_v43 }
 0x924   : > { %v2110_v45 = vmul.f32 %v2108_v44, %v2078_v28 }
 0x926   : > { %v2144_v46 = vpack.c.bf16 %v2110_v45, %v2110_v45 }
 0x928   : > { %2250 = vmatmul.bf16.vlgmr.msrb.gmra.mxu2 %v2144_v46 }
 0x9a5   : > { %v2264_v50 = vpop.f32.mrf.mxu3 }
 0x9ab   : > { %v2251_v51 = vpop.f32.mrf.mxu2 }
 0x9ac   : > { %v2265_v52 = vadd.f32 %v2264_v50, %v2251_v51 }
 0x9ad   : > { %v2266_v54 = vpop.f32.mrf.mxu3 }
 0x9ae   : > { %v2268_v55 = vadd.f32 %v2265_v52, %v3799_v13  ;;  %v3149_v13 = vld [vmem:[%s3986_s22 + $0x10] sm:$0xff] }
 0x9af   : > { %2360 = vmatpush.bf16.msra.mxu1 %v3149_v13 }
 0x9b0   : > { %v2273_v57 = vadd.f32 %v3177_v53, %v2268_v55 }
 0x9b2   : > { %v2274_v58 = vmul.f32 %v2273_v57, %v2273_v57 }
 0x9b3   : > { %v2253_v59 = vpop.f32.mrf.mxu2  ;;  %2361 = vmatpush.bf16.msra.mxu1 %v3148_v29 }
 0x9b4   : > { %2275 = vadd.xlane.f32.xlu0 %v2274_v58 }
 0x9b7   : > { %2362 = vmatpush.bf16.msra.mxu1 %v3147_v61 }
 0xa27   : > { %v2276_v63 = vpop.xlane.xlu0 %2275 }
 0xa28   : > { %v2277_v0 = vmul.f32 %v2276_v63, %v3736_v1 }
 0xa2a   : > { %v2278_v2 = vadd.f32 1e-06, %v2277_v0 }
 0xa2c   : > { %3196 = vrsqrt.f32 %v2278_v2  ;;  %vm2285_vm11 = vweird.f32 %v2278_v2 }
 0xa32   : > { %v3197_v3 = vpop.eup %3196 }
 0xa33   : > { %v2280_v4 = vmul.f32 %v3197_v3, %v2278_v2  ;;  %vm2286_vm10 = vweird.f32 %v3197_v3 }
 0xa34   : > { %vm2287_vm12 = vmor %vm2285_vm11, %vm2286_vm10 }
 0xa35   : > { %v2281_v5 = vmul.f32 %v3197_v3, %v2280_v4 }
 0xa37   : > { %v2282_v6 = vmul.f32 0.5, %v2281_v5 }
 0xa39   : > { %v2283_v7 = vsub.f32 1.5, %v2282_v6 }
 0xa3b   : > { %v2284_v8 = vmul.f32 %v3197_v3, %v2283_v7 }
 0xa3d   : > { %v2288_v9 = vsel %vm2287_vm12, %v3197_v3, %v2284_v8 }
 0xa3e   : > { %v2289_v10 = vmul.f32 %v2288_v9, %v2273_v57 }
 0xa40   : > { %v2306_v11 = vpack.c.bf16 %v2289_v10, %v2289_v10 }
 0xa42   : > { %2363 = vmatmul.bf16.vlgmr.msra.gmra.mxu1 %v2306_v11 }
 0xabf   : > { %v2364_v1 = vpop.f32.mrf.mxu1 }
 0xac0   : > { %2368 = vst [vmem:[%s744_s3] sm:$0xff] %v2364_v1 }
 0xac7   : > { %v2366_v12 = vpop.f32.mrf.mxu1 }
 0xac8 PF: > { %s33_s4 = sadd.s32 1, %s3204_s4  }
 0xac9   : > { %p30_p5 = scmp.ge.s32.totalorder %s33_s4, 4  }
 0xacb   :  { %32 = sbr.rel (!%p30_p5) target bundleno = 11 (0xb), region = 149 }

</bundles_post_ra>
